<compile_context>
chip_gen: v7x
topology: tpu7x:2x2x1
jax: 0.10.0
libtpu: 0.0.40
codegen_flags: <defaults>
</compile_context>

<pallas_src>
import functools
import math

import jax
import jax.numpy as jnp
from jax import lax
from jax.experimental import pallas as pl
from jax.experimental.pallas import tpu as pltpu


# ----------------------------------------------------------------------------
# Helpers.
# ----------------------------------------------------------------------------
def _pick_seq_tile(seq_len):
    """Largest sublane-aligned tile that divides seq_len (else full extent)."""
    for ts in (1024, 512, 256, 128, 64, 32, 16, 8):
        if seq_len % ts == 0:
            return ts
    return seq_len  # full-extent block is always legal


def _pick_head_group(num_heads, head_dim):
    """Smallest divisor g of num_heads whose g*head_dim slab is 128-lane aligned."""
    for g in range(1, num_heads + 1):
        if num_heads % g == 0 and (g * head_dim) % 128 == 0:
            return g
    return num_heads  # tiny models: all heads (full-hidden, lane-dense) per step


def _vmem_limit(required_bytes):
    """Scoped-VMEM budget: 2x headroom, capped well below physical per-core VMEM."""
    phys = 128 * 1024 * 1024
    try:
        phys = int(getattr(pltpu.get_tpu_info(), "vmem_capacity_bytes", phys))
    except Exception:
        pass
    ceiling = max(min(3 * phys // 4, 100 * 1024 * 1024), 16 * 1024 * 1024)
    return int(min(max(2 * required_bytes, 16 * 1024 * 1024), ceiling))


def fuse_qkv_params(params, num_attention_heads, compute_dtype=jnp.bfloat16):
    """Concatenate + pre-transpose the q/k/v nn.Linear weights once.

    The 1/sqrt(head_dim) attention scale is folded into the q columns so the
    kernels never apply it.
    """
    hidden = params["wq"].shape[0]
    head_dim = hidden // num_attention_heads
    scale = 1.0 / math.sqrt(head_dim)
    w_qkv = jnp.concatenate(
        [params["wq"].T * scale, params["wk"].T, params["wv"].T], axis=1)    # (H, 3H)
    b_qkv = jnp.concatenate(
        [params["bq"] * scale, params["bk"], params["bv"]]).reshape(1, -1)   # (1, 3H)
    return {"w_qkv": w_qkv.astype(compute_dtype),
            "b_qkv": b_qkv.astype(jnp.float32)}


# ----------------------------------------------------------------------------
# Kernel 1: fused Q/K/V projection.
#   grid = (B, S // ts); weights/bias resident; activations cast in-kernel.
#   Outputs q / k / v directly in [B, NH, S, Dh] per-head layout.
# ----------------------------------------------------------------------------
def _qkv_proj_kernel(x_ref, w_ref, b_ref, q_ref, k_ref, v_ref, *,
                     num_heads, head_dim, compute_dtype):
    H = num_heads * head_dim
    x = x_ref[0].astype(compute_dtype)                          # in-kernel f32->bf16
    acc = jnp.dot(x, w_ref[...],
                  preferred_element_type=jnp.float32) + b_ref[...]   # (ts, 3H) f32
    for h in range(num_heads):                                   # small static unroll
        lo = h * head_dim
        q_ref[0, h] = acc[:, lo:lo + head_dim].astype(q_ref.dtype)
        k_ref[0, h] = acc[:, H + lo:H + lo + head_dim].astype(k_ref.dtype)
        v_ref[0, h] = acc[:, 2 * H + lo:2 * H + lo + head_dim].astype(v_ref.dtype)


def qkv_projection(hidden_states, w_qkv, b_qkv, num_heads, head_dim, compute_dtype):
    """hidden_states: [B, S, H] (any float dtype); w_qkv: [H, 3H]; b_qkv: [1, 3H]."""
    B, S, H = hidden_states.shape
    H3 = w_qkv.shape[1]
    ts = _pick_seq_tile(S)
    cache_dtype = hidden_states.dtype   # returned cache keeps input precision

    kernel = functools.partial(_qkv_proj_kernel, num_heads=num_heads,
                               head_dim=head_dim, compute_dtype=compute_dtype)

    x_it = hidden_states.dtype.itemsize
    w_it = w_qkv.dtype.itemsize
    c_it = jnp.dtype(compute_dtype).itemsize
    o_it = jnp.dtype(cache_dtype).itemsize
    required = (2 * H * H3 * w_it + H3 * 4            # weights (double-buffered) + bias
                + 2 * ts * H * x_it                   # activation tiles
                + 2 * ts * H * c_it                   # q tiles
                + 4 * ts * H * o_it                   # k, v tiles
                + ts * H3 * 4)                        # f32 accumulator headroom

    return pl.pallas_call(
        kernel,
        grid=(B, S // ts),
        in_specs=[
            pl.BlockSpec((1, ts, H), lambda b, si: (b, si, 0)),   # activations
            pl.BlockSpec((H, H3), lambda b, si: (0, 0)),          # fused weights
            pl.BlockSpec((1, H3), lambda b, si: (0, 0)),          # fused bias
        ],
        out_specs=[
            pl.BlockSpec((1, num_heads, ts, head_dim), lambda b, si: (b, 0, si, 0)),
            pl.BlockSpec((1, num_heads, ts, head_dim), lambda b, si: (b, 0, si, 0)),
            pl.BlockSpec((1, num_heads, ts, head_dim), lambda b, si: (b, 0, si, 0)),
        ],
        out_shape=(
            jax.ShapeDtypeStruct((B, num_heads, S, head_dim), compute_dtype),
            jax.ShapeDtypeStruct((B, num_heads, S, head_dim), cache_dtype),
            jax.ShapeDtypeStruct((B, num_heads, S, head_dim), cache_dtype),
        ),
        compiler_params=pltpu.CompilerParams(
            dimension_semantics=("parallel", "parallel"),
            vmem_limit_bytes=_vmem_limit(required)),
    )(hidden_states, w_qkv, b_qkv)


# ----------------------------------------------------------------------------
# Kernel 2: cached attention core. grid = (B, num_head_groups).
#   q:             [B, NH, S,  Dh]  (already scaled by 1/sqrt(Dh) via weights)
#   cache k/v:     [B, NH, Sc, Dh]  (previous-turn cache; read as-is, cast in-kernel)
#   self  k/v:     [B, NH, S,  Dh]
#   mask_cache:    [B, 1, 1, Sc],  mask_self: [B, 1, 1, S]
#   out:           [B, S, H]       (lane-dense per-group slab, no post-transpose)
# Joint softmax over [cache ; self] keys via shared max / shared denominator —
# identical to the reference's concat + softmax.
# ----------------------------------------------------------------------------
def _cache_attn_kernel(q_ref, kc_ref, vc_ref, ks_ref, vs_ref, mc_ref, ms_ref,
                       out_ref, *, heads_per_group, compute_dtype):
    mc = mc_ref[0, 0].astype(jnp.float32)                        # (1, Sc)
    ms = ms_ref[0, 0].astype(jnp.float32)                        # (1, S)

    ctx_parts = []
    for i in range(heads_per_group):                             # tiny static unroll (g<=~2)
        q = q_ref[0, i].astype(compute_dtype)                    # (S, Dh)
        kc = kc_ref[0, i].astype(compute_dtype)                  # (Sc, Dh)
        ks = ks_ref[0, i].astype(compute_dtype)                  # (S, Dh)

        sc = lax.dot_general(q, kc, (((1,), (1,)), ((), ())),
                             preferred_element_type=jnp.float32) + mc   # (S, Sc)
        ss = lax.dot_general(q, ks, (((1,), (1,)), ((), ())),
                             preferred_element_type=jnp.float32) + ms   # (S, S)

        m = jnp.maximum(jnp.max(sc, axis=-1, keepdims=True),
                        jnp.max(ss, axis=-1, keepdims=True))             # (S, 1)
        ec = jnp.exp(sc - m)
        es = jnp.exp(ss - m)
        denom = jnp.sum(ec, axis=-1, keepdims=True) + jnp.sum(es, axis=-1, keepdims=True)
        inv = pl.reciprocal(denom, approx=True)                  # EUP slot

        vc = vc_ref[0, i].astype(compute_dtype)
        vs = vs_ref[0, i].astype(compute_dtype)
        ctx = (lax.dot_general(ec.astype(compute_dtype), vc,
                               (((1,), (0,)), ((), ())),
                               preferred_element_type=jnp.float32)
               + lax.dot_general(es.astype(compute_dtype), vs,
                                 (((1,), (0,)), ((), ())),
                                 preferred_element_type=jnp.float32))    # (S, Dh)
        ctx_parts.append(ctx * inv)

    out_ref[0] = jnp.concatenate(ctx_parts, axis=-1).astype(out_ref.dtype)


def cache_attention(q, k_cache, v_cache, k_self, v_self, mask_cache, mask_self,
                    num_heads, head_dim, compute_dtype, out_dtype):
    B, NH, S, Dh = q.shape
    Sc = k_cache.shape[2]
    g = _pick_head_group(num_heads, head_dim)
    num_groups = num_heads // g

    kernel = functools.partial(_cache_attn_kernel, heads_per_group=g,
                               compute_dtype=compute_dtype)

    q_it = q.dtype.itemsize
    kc_it = k_cache.dtype.itemsize
    ks_it = k_self.dtype.itemsize
    o_it = jnp.dtype(out_dtype).itemsize
    required = (2 * (g * S * Dh * q_it
                     + 2 * g * Sc * Dh * kc_it
                     + 2 * g * S * Dh * ks_it
                     + (Sc + S) * 4
                     + S * g * Dh * o_it)
                + 4 * S * (Sc + S) * 4)               # score/prob temporaries headroom

    return pl.pallas_call(
        kernel,
        grid=(B, num_groups),
        in_specs=[
            pl.BlockSpec((1, g, S, Dh), lambda b, hg: (b, hg, 0, 0)),    # q
            pl.BlockSpec((1, g, Sc, Dh), lambda b, hg: (b, hg, 0, 0)),   # cache key
            pl.BlockSpec((1, g, Sc, Dh), lambda b, hg: (b, hg, 0, 0)),   # cache value
            pl.BlockSpec((1, g, S, Dh), lambda b, hg: (b, hg, 0, 0)),    # self key
            pl.BlockSpec((1, g, S, Dh), lambda b, hg: (b, hg, 0, 0)),    # self value
            pl.BlockSpec((1, 1, 1, Sc), lambda b, hg: (b, 0, 0, 0)),     # mask (cache)
            pl.BlockSpec((1, 1, 1, S), lambda b, hg: (b, 0, 0, 0)),      # mask (self)
        ],
        out_specs=pl.BlockSpec((1, S, g * Dh), lambda b, hg: (b, 0, hg)),
        out_shape=jax.ShapeDtypeStruct((B, S, NH * Dh), out_dtype),
        compiler_params=pltpu.CompilerParams(
            dimension_semantics=("parallel", "parallel"),
            vmem_limit_bytes=_vmem_limit(required)),
    )(q, k_cache, v_cache, k_self, v_self, mask_cache, mask_self)


# ----------------------------------------------------------------------------
# Module-level forward.
# ----------------------------------------------------------------------------
def bert_cache_attention_forward(hidden_states, attention_mask, fused_params,
                                 num_attention_heads, attn_cache=None,
                                 compute_dtype=jnp.bfloat16):
    B, S, H = hidden_states.shape
    head_dim = H // num_attention_heads

    # Fused QKV projection, emitting per-head layout directly from the kernel.
    q, key_layer, value_layer = qkv_projection(
        hidden_states, fused_params["w_qkv"], fused_params["b_qkv"],
        num_attention_heads, head_dim, compute_dtype)
    new_attn_cache = [{"key": key_layer, "value": value_layer}]

    if not attn_cache:
        # TODO(synk): cache-less path (plain self-attention) not exercised here.
        raise NotImplementedError(
            "this script exercises the single matched-batch cache path")
    cache = attn_cache[0]
    if cache["key"].shape[0] != B:
        # TODO(synk): slot-transposed (if_tf == 1) cache path not implemented.
        raise NotImplementedError("if_tf == 1 cache path not implemented")
    Sc = cache["key"].shape[2]

    # Split the extended mask over [cache ; current] keys (tiny tensors, no big
    # HBM pass); cache K/V are consumed as-is — no concat / cast rewrite of the
    # whole cache in HBM.
    mask_cache = attention_mask[..., :Sc]
    mask_self = attention_mask[..., Sc:]

    context_layer = cache_attention(
        q, cache["key"], cache["value"], key_layer, value_layer,
        mask_cache, mask_self, num_attention_heads, head_dim, compute_dtype,
        out_dtype=hidden_states.dtype)                           # [B, S, H]
    return context_layer, new_attn_cache


# ----------------------------------------------------------------------------
# Pure-JAX reference (eval mode) for correctness checking.
# ----------------------------------------------------------------------------
def reference_forward(hidden_states, attention_mask, params, num_heads, attn_cache):
    B, S, H = hidden_states.shape
    Dh = H // num_heads

    def lin(x, w, b):
        return x @ w.T + b

    q = lin(hidden_states, params["wq"], params["bq"])
    k = lin(hidden_states, params["wk"], params["bk"])
    v = lin(hidden_states, params["wv"], params["bv"])

    def t4(x):
        return x.reshape(B, S, num_heads, Dh).transpose(0, 2, 1, 3)

    ql, kl, vl = t4(q), t4(k), t4(v)
    ck, cv = attn_cache[0]["key"], attn_cache[0]["value"]
    Sc = ck.shape[2]

    self_scores = jnp.einsum("bhqd,bhkd->bhqk", ql, kl)
    cache_scores = jnp.einsum("bhqd,bhkd->bhqk", ql, ck)
    scores = jnp.concatenate([cache_scores, self_scores], axis=-1) / math.sqrt(Dh)
    scores = scores + attention_mask
    probs = jax.nn.softmax(scores, axis=-1)
    ctx = (jnp.einsum("bhqk,bhkd->bhqd", probs[..., Sc:], vl)
           + jnp.einsum("bhqk,bhkd->bhqd", probs[..., :Sc], cv))
    return ctx.transpose(0, 2, 1, 3).reshape(B, S, H)


# ----------------------------------------------------------------------------
# Demo / smoke test.
# ----------------------------------------------------------------------------
if __name__ == "__main__":
    B, S, hidden, num_heads = 2, 8, 32, 4
    head_dim = hidden // num_heads
    cache_len = 8
    L = cache_len + S

    root = jax.random.PRNGKey(0)
    keys = jax.random.split(root, 10)

    params = {
        "wq": 0.02 * jax.random.normal(keys[0], (hidden, hidden), jnp.float32),
        "bq": 0.02 * jax.random.normal(keys[1], (hidden,), jnp.float32),
        "wk": 0.02 * jax.random.normal(keys[2], (hidden, hidden), jnp.float32),
        "bk": 0.02 * jax.random.normal(keys[3], (hidden,), jnp.float32),
        "wv": 0.02 * jax.random.normal(keys[4], (hidden, hidden), jnp.float32),
        "bv": 0.02 * jax.random.normal(keys[5], (hidden,), jnp.float32),
    }

    hidden_states = jax.random.normal(keys[6], (B, S, hidden), jnp.float32)

    # extended attention mask (0 keep / -10000 mask) over [cache ; current] keys
    pos = jnp.arange(L)
    attention_mask = jnp.where(pos >= L - 2, -10000.0, 0.0).astype(jnp.float32)
    attention_mask = jnp.broadcast_to(attention_mask, (B, 1, 1, L))

    attn_cache = [{
        "key": jax.random.normal(keys[7], (B, num_heads, cache_len, head_dim),
                                 jnp.float32),
        "value": jax.random.normal(keys[8], (B, num_heads, cache_len, head_dim),
                                   jnp.float32),
    }]

    # Fuse the q/k/v weights once (1/sqrt(Dh) folded into the q columns).
    fused_params = fuse_qkv_params(params, num_heads, compute_dtype=jnp.bfloat16)

    fwd = jax.jit(functools.partial(bert_cache_attention_forward,
                                    num_attention_heads=num_heads,
                                    compute_dtype=jnp.bfloat16))
    context_layer, new_attn_cache = fwd(hidden_states, attention_mask,
                                        fused_params, attn_cache=attn_cache)

    jax.block_until_ready(context_layer)
    jax.block_until_ready(new_attn_cache[0]["key"])
    jax.block_until_ready(new_attn_cache[0]["value"])

    assert context_layer.shape == (B, S, hidden)
    assert new_attn_cache[0]["key"].shape == (B, num_heads, S, head_dim)
    assert new_attn_cache[0]["value"].shape == (B, num_heads, S, head_dim)

    # Numerical check against the pure-JAX f32 reference (bf16 compute tolerance).
    ref = reference_forward(hidden_states, attention_mask, params, num_heads,
                            attn_cache)
    max_err = float(jnp.max(jnp.abs(context_layer.astype(jnp.float32) - ref)))
    assert max_err < 2e-2, f"max abs error {max_err}"

    print("KERNEL_OK")
</pallas_src>

<mosaic_0001>
module attributes {stable_mosaic.version = 11 : i64} {
  func.func @_qkv_proj_kernel(%arg0: i32, %arg1: i32, %arg2: memref<1x8x32xf32, #tpu.memory_space<vmem>>, %arg3: memref<32x96xbf16, #tpu.memory_space<vmem>>, %arg4: memref<1x96xf32, #tpu.memory_space<vmem>>, %arg5: memref<1x4x8x8xbf16, #tpu.memory_space<vmem>>, %arg6: memref<1x4x8x8xf32, #tpu.memory_space<vmem>>, %arg7: memref<1x4x8x8xf32, #tpu.memory_space<vmem>>) attributes {dimension_semantics = [#tpu.dimension_semantics<parallel>, #tpu.dimension_semantics<parallel>], iteration_bounds = array<i64: 2, 1>, scalar_prefetch = 0 : i64, scratch_operands = 0 : i64, tpu.core_type = #tpu.core_type<tc>, window_params = [{transform_indices = @transform_0, window_bounds = array<i64: 1, 8, 32>}, {pipeline_mode = #tpu.pipeline_mode<synchronous>, transform_indices = @transform_1, window_bounds = array<i64: 32, 96>}, {pipeline_mode = #tpu.pipeline_mode<synchronous>, transform_indices = @transform_2, window_bounds = array<i64: 1, 96>}, {transform_indices = @transform_3, window_bounds = array<i64: 1, 4, 8, 8>}, {transform_indices = @transform_4, window_bounds = array<i64: 1, 4, 8, 8>}, {transform_indices = @transform_5, window_bounds = array<i64: 1, 4, 8, 8>}]} {
    %c0 = arith.constant 0 : index
    %c0_0 = arith.constant 0 : index
    %c0_1 = arith.constant 0 : index
    %0 = vector.load %arg2[%c0, %c0_0, %c0_1] : memref<1x8x32xf32, #tpu.memory_space<vmem>>, vector<1x8x32xf32>
    %1 = vector.shape_cast %0 : vector<1x8x32xf32> to vector<8x32xf32>
    %2 = arith.truncf %1 : vector<8x32xf32> to vector<8x32xbf16>
    %c0_2 = arith.constant 0 : index
    %c0_3 = arith.constant 0 : index
    %3 = vector.load %arg3[%c0_2, %c0_3] : memref<32x96xbf16, #tpu.memory_space<vmem>>, vector<32x96xbf16>
    %cst = arith.constant dense<0.000000e+00> : vector<8x96xf32>
    %4 = tpu.matmul %2, %3, %cst {dimension_numbers = #tpu.dot_dimension_numbers<[1], [0], [0], [1], [0, 0, 1, 1], [], []>} : vector<8x32xbf16>, vector<32x96xbf16>, vector<8x96xf32> -> vector<8x96xf32>
    %c0_4 = arith.constant 0 : index
    %c0_5 = arith.constant 0 : index
    %5 = vector.load %arg4[%c0_4, %c0_5] : memref<1x96xf32, #tpu.memory_space<vmem>>, vector<1x96xf32>
    %6 = vector.broadcast %5 : vector<1x96xf32> to vector<8x96xf32>
    %7 = arith.addf %4, %6 : vector<8x96xf32>
    %8 = vector.extract_strided_slice %7 {offsets = [0, 0], sizes = [8, 8], strides = [1, 1]} : vector<8x96xf32> to vector<8x8xf32>
    %9 = arith.truncf %8 : vector<8x8xf32> to vector<8x8xbf16>
    %c0_6 = arith.constant 0 : index
    %c0_7 = arith.constant 0 : index
    %c0_8 = arith.constant 0 : index
    %c0_9 = arith.constant 0 : index
    %10 = vector.load %arg5[%c0_6, %c0_7, %c0_8, %c0_9] : memref<1x4x8x8xbf16, #tpu.memory_space<vmem>>, vector<1x1x8x8xbf16>
    %11 = vector.shape_cast %10 : vector<1x1x8x8xbf16> to vector<8x8xbf16>
    %12 = vector.shape_cast %9 : vector<8x8xbf16> to vector<1x1x8x8xbf16>
    tpu.vector_store %arg5[%c0_6, %c0_7, %c0_8, %c0_9], %12 {strides = array<i32>} : memref<1x4x8x8xbf16, #tpu.memory_space<vmem>>, vector<1x1x8x8xbf16>,
    %13 = vector.extract_strided_slice %7 {offsets = [0, 32], sizes = [8, 8], strides = [1, 1]} : vector<8x96xf32> to vector<8x8xf32>
    %c0_10 = arith.constant 0 : index
    %c0_11 = arith.constant 0 : index
    %c0_12 = arith.constant 0 : index
    %c0_13 = arith.constant 0 : index
    %14 = vector.load %arg6[%c0_10, %c0_11, %c0_12, %c0_13] : memref<1x4x8x8xf32, #tpu.memory_space<vmem>>, vector<1x1x8x8xf32>
    %15 = vector.shape_cast %14 : vector<1x1x8x8xf32> to vector<8x8xf32>
    %16 = vector.shape_cast %13 : vector<8x8xf32> to vector<1x1x8x8xf32>
    tpu.vector_store %arg6[%c0_10, %c0_11, %c0_12, %c0_13], %16 {strides = array<i32>} : memref<1x4x8x8xf32, #tpu.memory_space<vmem>>, vector<1x1x8x8xf32>,
    %17 = vector.extract_strided_slice %7 {offsets = [0, 64], sizes = [8, 8], strides = [1, 1]} : vector<8x96xf32> to vector<8x8xf32>
    %c0_14 = arith.constant 0 : index
    %c0_15 = arith.constant 0 : index
    %c0_16 = arith.constant 0 : index
    %c0_17 = arith.constant 0 : index
    %18 = vector.load %arg7[%c0_14, %c0_15, %c0_16, %c0_17] : memref<1x4x8x8xf32, #tpu.memory_space<vmem>>, vector<1x1x8x8xf32>
    %19 = vector.shape_cast %18 : vector<1x1x8x8xf32> to vector<8x8xf32>
    %20 = vector.shape_cast %17 : vector<8x8xf32> to vector<1x1x8x8xf32>
    tpu.vector_store %arg7[%c0_14, %c0_15, %c0_16, %c0_17], %20 {strides = array<i32>} : memref<1x4x8x8xf32, #tpu.memory_space<vmem>>, vector<1x1x8x8xf32>,
    %21 = vector.extract_strided_slice %7 {offsets = [0, 8], sizes = [8, 8], strides = [1, 1]} : vector<8x96xf32> to vector<8x8xf32>
    %22 = arith.truncf %21 : vector<8x8xf32> to vector<8x8xbf16>
    %c0_18 = arith.constant 0 : index
    %c1 = arith.constant 1 : index
    %c0_19 = arith.constant 0 : index
    %c0_20 = arith.constant 0 : index
    %23 = vector.load %arg5[%c0_18, %c1, %c0_19, %c0_20] : memref<1x4x8x8xbf16, #tpu.memory_space<vmem>>, vector<1x1x8x8xbf16>
    %24 = vector.shape_cast %23 : vector<1x1x8x8xbf16> to vector<8x8xbf16>
    %25 = vector.shape_cast %22 : vector<8x8xbf16> to vector<1x1x8x8xbf16>
    tpu.vector_store %arg5[%c0_18, %c1, %c0_19, %c0_20], %25 {strides = array<i32>} : memref<1x4x8x8xbf16, #tpu.memory_space<vmem>>, vector<1x1x8x8xbf16>,
    %26 = vector.extract_strided_slice %7 {offsets = [0, 40], sizes = [8, 8], strides = [1, 1]} : vector<8x96xf32> to vector<8x8xf32>
    %c0_21 = arith.constant 0 : index
    %c1_22 = arith.constant 1 : index
    %c0_23 = arith.constant 0 : index
    %c0_24 = arith.constant 0 : index
    %27 = vector.load %arg6[%c0_21, %c1_22, %c0_23, %c0_24] : memref<1x4x8x8xf32, #tpu.memory_space<vmem>>, vector<1x1x8x8xf32>
    %28 = vector.shape_cast %27 : vector<1x1x8x8xf32> to vector<8x8xf32>
    %29 = vector.shape_cast %26 : vector<8x8xf32> to vector<1x1x8x8xf32>
    tpu.vector_store %arg6[%c0_21, %c1_22, %c0_23, %c0_24], %29 {strides = array<i32>} : memref<1x4x8x8xf32, #tpu.memory_space<vmem>>, vector<1x1x8x8xf32>,
    %30 = vector.extract_strided_slice %7 {offsets = [0, 72], sizes = [8, 8], strides = [1, 1]} : vector<8x96xf32> to vector<8x8xf32>
    %c0_25 = arith.constant 0 : index
    %c1_26 = arith.constant 1 : index
    %c0_27 = arith.constant 0 : index
    %c0_28 = arith.constant 0 : index
    %31 = vector.load %arg7[%c0_25, %c1_26, %c0_27, %c0_28] : memref<1x4x8x8xf32, #tpu.memory_space<vmem>>, vector<1x1x8x8xf32>
    %32 = vector.shape_cast %31 : vector<1x1x8x8xf32> to vector<8x8xf32>
    %33 = vector.shape_cast %30 : vector<8x8xf32> to vector<1x1x8x8xf32>
    tpu.vector_store %arg7[%c0_25, %c1_26, %c0_27, %c0_28], %33 {strides = array<i32>} : memref<1x4x8x8xf32, #tpu.memory_space<vmem>>, vector<1x1x8x8xf32>,
    %34 = vector.extract_strided_slice %7 {offsets = [0, 16], sizes = [8, 8], strides = [1, 1]} : vector<8x96xf32> to vector<8x8xf32>
    %35 = arith.truncf %34 : vector<8x8xf32> to vector<8x8xbf16>
    %c0_29 = arith.constant 0 : index
    %c2 = arith.constant 2 : index
    %c0_30 = arith.constant 0 : index
    %c0_31 = arith.constant 0 : index
    %36 = vector.load %arg5[%c0_29, %c2, %c0_30, %c0_31] : memref<1x4x8x8xbf16, #tpu.memory_space<vmem>>, vector<1x1x8x8xbf16>
    %37 = vector.shape_cast %36 : vector<1x1x8x8xbf16> to vector<8x8xbf16>
    %38 = vector.shape_cast %35 : vector<8x8xbf16> to vector<1x1x8x8xbf16>
    tpu.vector_store %arg5[%c0_29, %c2, %c0_30, %c0_31], %38 {strides = array<i32>} : memref<1x4x8x8xbf16, #tpu.memory_space<vmem>>, vector<1x1x8x8xbf16>,
    %39 = vector.extract_strided_slice %7 {offsets = [0, 48], sizes = [8, 8], strides = [1, 1]} : vector<8x96xf32> to vector<8x8xf32>
    %c0_32 = arith.constant 0 : index
    %c2_33 = arith.constant 2 : index
    %c0_34 = arith.constant 0 : index
    %c0_35 = arith.constant 0 : index
    %40 = vector.load %arg6[%c0_32, %c2_33, %c0_34, %c0_35] : memref<1x4x8x8xf32, #tpu.memory_space<vmem>>, vector<1x1x8x8xf32>
    %41 = vector.shape_cast %40 : vector<1x1x8x8xf32> to vector<8x8xf32>
    %42 = vector.shape_cast %39 : vector<8x8xf32> to vector<1x1x8x8xf32>
    tpu.vector_store %arg6[%c0_32, %c2_33, %c0_34, %c0_35], %42 {strides = array<i32>} : memref<1x4x8x8xf32, #tpu.memory_space<vmem>>, vector<1x1x8x8xf32>,
    %43 = vector.extract_strided_slice %7 {offsets = [0, 80], sizes = [8, 8], strides = [1, 1]} : vector<8x96xf32> to vector<8x8xf32>
    %c0_36 = arith.constant 0 : index
    %c2_37 = arith.constant 2 : index
    %c0_38 = arith.constant 0 : index
    %c0_39 = arith.constant 0 : index
    %44 = vector.load %arg7[%c0_36, %c2_37, %c0_38, %c0_39] : memref<1x4x8x8xf32, #tpu.memory_space<vmem>>, vector<1x1x8x8xf32>
    %45 = vector.shape_cast %44 : vector<1x1x8x8xf32> to vector<8x8xf32>
    %46 = vector.shape_cast %43 : vector<8x8xf32> to vector<1x1x8x8xf32>
    tpu.vector_store %arg7[%c0_36, %c2_37, %c0_38, %c0_39], %46 {strides = array<i32>} : memref<1x4x8x8xf32, #tpu.memory_space<vmem>>, vector<1x1x8x8xf32>,
    %47 = vector.extract_strided_slice %7 {offsets = [0, 24], sizes = [8, 8], strides = [1, 1]} : vector<8x96xf32> to vector<8x8xf32>
    %48 = arith.truncf %47 : vector<8x8xf32> to vector<8x8xbf16>
    %c0_40 = arith.constant 0 : index
    %c3 = arith.constant 3 : index
    %c0_41 = arith.constant 0 : index
    %c0_42 = arith.constant 0 : index
    %49 = vector.load %arg5[%c0_40, %c3, %c0_41, %c0_42] : memref<1x4x8x8xbf16, #tpu.memory_space<vmem>>, vector<1x1x8x8xbf16>
    %50 = vector.shape_cast %49 : vector<1x1x8x8xbf16> to vector<8x8xbf16>
    %51 = vector.shape_cast %48 : vector<8x8xbf16> to vector<1x1x8x8xbf16>
    tpu.vector_store %arg5[%c0_40, %c3, %c0_41, %c0_42], %51 {strides = array<i32>} : memref<1x4x8x8xbf16, #tpu.memory_space<vmem>>, vector<1x1x8x8xbf16>,
    %52 = vector.extract_strided_slice %7 {offsets = [0, 56], sizes = [8, 8], strides = [1, 1]} : vector<8x96xf32> to vector<8x8xf32>
    %c0_43 = arith.constant 0 : index
    %c3_44 = arith.constant 3 : index
    %c0_45 = arith.constant 0 : index
    %c0_46 = arith.constant 0 : index
    %53 = vector.load %arg6[%c0_43, %c3_44, %c0_45, %c0_46] : memref<1x4x8x8xf32, #tpu.memory_space<vmem>>, vector<1x1x8x8xf32>
    %54 = vector.shape_cast %53 : vector<1x1x8x8xf32> to vector<8x8xf32>
    %55 = vector.shape_cast %52 : vector<8x8xf32> to vector<1x1x8x8xf32>
    tpu.vector_store %arg6[%c0_43, %c3_44, %c0_45, %c0_46], %55 {strides = array<i32>} : memref<1x4x8x8xf32, #tpu.memory_space<vmem>>, vector<1x1x8x8xf32>,
    %56 = vector.extract_strided_slice %7 {offsets = [0, 88], sizes = [8, 8], strides = [1, 1]} : vector<8x96xf32> to vector<8x8xf32>
    %c0_47 = arith.constant 0 : index
    %c3_48 = arith.constant 3 : index
    %c0_49 = arith.constant 0 : index
    %c0_50 = arith.constant 0 : index
    %57 = vector.load %arg7[%c0_47, %c3_48, %c0_49, %c0_50] : memref<1x4x8x8xf32, #tpu.memory_space<vmem>>, vector<1x1x8x8xf32>
    %58 = vector.shape_cast %57 : vector<1x1x8x8xf32> to vector<8x8xf32>
    %59 = vector.shape_cast %56 : vector<8x8xf32> to vector<1x1x8x8xf32>
    tpu.vector_store %arg7[%c0_47, %c3_48, %c0_49, %c0_50], %59 {strides = array<i32>} : memref<1x4x8x8xf32, #tpu.memory_space<vmem>>, vector<1x1x8x8xf32>,
    return
  }
  func.func @transform_0(%arg0: i32, %arg1: i32) -> (i32, i32, i32) {
    %c0_i32 = arith.constant 0 : i32
    %c0_i32_0 = arith.constant 0 : i32
    return %arg0, %arg1, %c0_i32 : i32, i32, i32
  }
  func.func @transform_1(%arg0: i32, %arg1: i32) -> (i32, i32) {
    %c0_i32 = arith.constant 0 : i32
    %c0_i32_0 = arith.constant 0 : i32
    %c0_i32_1 = arith.constant 0 : i32
    return %c0_i32, %c0_i32_0 : i32, i32
  }
  func.func @transform_2(%arg0: i32, %arg1: i32) -> (i32, i32) {
    %c0_i32 = arith.constant 0 : i32
    %c0_i32_0 = arith.constant 0 : i32
    %c0_i32_1 = arith.constant 0 : i32
    return %c0_i32, %c0_i32_0 : i32, i32
  }
  func.func @transform_3(%arg0: i32, %arg1: i32) -> (i32, i32, i32, i32) {
    %c0_i32 = arith.constant 0 : i32
    %c0_i32_0 = arith.constant 0 : i32
    %c0_i32_1 = arith.constant 0 : i32
    return %arg0, %c0_i32, %arg1, %c0_i32_0 : i32, i32, i32, i32
  }
  func.func @transform_4(%arg0: i32, %arg1: i32) -> (i32, i32, i32, i32) {
    %c0_i32 = arith.constant 0 : i32
    %c0_i32_0 = arith.constant 0 : i32
    %c0_i32_1 = arith.constant 0 : i32
    return %arg0, %c0_i32, %arg1, %c0_i32_0 : i32, i32, i32, i32
  }
  func.func @transform_5(%arg0: i32, %arg1: i32) -> (i32, i32, i32, i32) {
    %c0_i32 = arith.constant 0 : i32
    %c0_i32_0 = arith.constant 0 : i32
    %c0_i32_1 = arith.constant 0 : i32
    return %arg0, %c0_i32, %arg1, %c0_i32_0 : i32, i32, i32, i32
  }
}

module attributes {stable_mosaic.version = 11 : i64} {
  func.func @_cache_attn_kernel(%arg0: i32, %arg1: i32, %arg2: memref<1x4x8x8xbf16, #tpu.memory_space<vmem>>, %arg3: memref<1x4x8x8xf32, #tpu.memory_space<vmem>>, %arg4: memref<1x4x8x8xf32, #tpu.memory_space<vmem>>, %arg5: memref<1x4x8x8xf32, #tpu.memory_space<vmem>>, %arg6: memref<1x4x8x8xf32, #tpu.memory_space<vmem>>, %arg7: memref<1x1x1x8xf32, #tpu.memory_space<vmem>>, %arg8: memref<1x1x1x8xf32, #tpu.memory_space<vmem>>, %arg9: memref<1x8x32xf32, #tpu.memory_space<vmem>>) attributes {dimension_semantics = [#tpu.dimension_semantics<parallel>, #tpu.dimension_semantics<parallel>], iteration_bounds = array<i64: 2, 1>, scalar_prefetch = 0 : i64, scratch_operands = 0 : i64, tpu.core_type = #tpu.core_type<tc>, window_params = [{transform_indices = @transform_0, window_bounds = array<i64: 1, 4, 8, 8>}, {transform_indices = @transform_1, window_bounds = array<i64: 1, 4, 8, 8>}, {transform_indices = @transform_2, window_bounds = array<i64: 1, 4, 8, 8>}, {transform_indices = @transform_3, window_bounds = array<i64: 1, 4, 8, 8>}, {transform_indices = @transform_4, window_bounds = array<i64: 1, 4, 8, 8>}, {transform_indices = @transform_5, window_bounds = array<i64: 1, 1, 1, 8>}, {transform_indices = @transform_6, window_bounds = array<i64: 1, 1, 1, 8>}, {transform_indices = @transform_7, window_bounds = array<i64: 1, 8, 32>}]} {
    %c0 = arith.constant 0 : index
    %c0_0 = arith.constant 0 : index
    %c0_1 = arith.constant 0 : index
    %c0_2 = arith.constant 0 : index
    %0 = vector.load %arg7[%c0, %c0_0, %c0_1, %c0_2] : memref<1x1x1x8xf32, #tpu.memory_space<vmem>>, vector<1x1x1x8xf32>
    %1 = vector.shape_cast %0 : vector<1x1x1x8xf32> to vector<1x8xf32>
    %c0_3 = arith.constant 0 : index
    %c0_4 = arith.constant 0 : index
    %c0_5 = arith.constant 0 : index
    %c0_6 = arith.constant 0 : index
    %2 = vector.load %arg8[%c0_3, %c0_4, %c0_5, %c0_6] : memref<1x1x1x8xf32, #tpu.memory_space<vmem>>, vector<1x1x1x8xf32>
    %3 = vector.shape_cast %2 : vector<1x1x1x8xf32> to vector<1x8xf32>
    %c0_7 = arith.constant 0 : index
    %c0_8 = arith.constant 0 : index
    %c0_9 = arith.constant 0 : index
    %c0_10 = arith.constant 0 : index
    %4 = vector.load %arg2[%c0_7, %c0_8, %c0_9, %c0_10] : memref<1x4x8x8xbf16, #tpu.memory_space<vmem>>, vector<1x1x8x8xbf16>
    %5 = vector.shape_cast %4 : vector<1x1x8x8xbf16> to vector<8x8xbf16>
    %c0_11 = arith.constant 0 : index
    %c0_12 = arith.constant 0 : index
    %c0_13 = arith.constant 0 : index
    %c0_14 = arith.constant 0 : index
    %6 = vector.load %arg3[%c0_11, %c0_12, %c0_13, %c0_14] : memref<1x4x8x8xf32, #tpu.memory_space<vmem>>, vector<1x1x8x8xf32>
    %7 = vector.shape_cast %6 : vector<1x1x8x8xf32> to vector<8x8xf32>
    %8 = arith.truncf %7 : vector<8x8xf32> to vector<8x8xbf16>
    %c0_15 = arith.constant 0 : index
    %c0_16 = arith.constant 0 : index
    %c0_17 = arith.constant 0 : index
    %c0_18 = arith.constant 0 : index
    %9 = vector.load %arg5[%c0_15, %c0_16, %c0_17, %c0_18] : memref<1x4x8x8xf32, #tpu.memory_space<vmem>>, vector<1x1x8x8xf32>
    %10 = vector.shape_cast %9 : vector<1x1x8x8xf32> to vector<8x8xf32>
    %11 = arith.truncf %10 : vector<8x8xf32> to vector<8x8xbf16>
    %cst = arith.constant dense<0.000000e+00> : vector<8x8xf32>
    %12 = tpu.matmul %5, %8, %cst {dimension_numbers = #tpu.dot_dimension_numbers<[1], [1], [0], [0], [0, 0, 1, 0], [], []>} : vector<8x8xbf16>, vector<8x8xbf16>, vector<8x8xf32> -> vector<8x8xf32>
    %13 = vector.broadcast %1 : vector<1x8xf32> to vector<8x8xf32>
    %14 = arith.addf %12, %13 : vector<8x8xf32>
    %cst_19 = arith.constant dense<0.000000e+00> : vector<8x8xf32>
    %15 = tpu.matmul %5, %11, %cst_19 {dimension_numbers = #tpu.dot_dimension_numbers<[1], [1], [0], [0], [0, 0, 1, 0], [], []>} : vector<8x8xbf16>, vector<8x8xbf16>, vector<8x8xf32> -> vector<8x8xf32>
    %16 = vector.broadcast %3 : vector<1x8xf32> to vector<8x8xf32>
    %17 = arith.addf %15, %16 : vector<8x8xf32>
    %cst_20 = arith.constant dense<0xFF800000> : vector<8xf32>
    %18 = vector.multi_reduction <maximumf>, %14, %cst_20 [1] : vector<8x8xf32> to vector<8xf32>
    %19 = vector.shape_cast %18 : vector<8xf32> to vector<8x1xf32>
    %cst_21 = arith.constant dense<0xFF800000> : vector<8xf32>
    %20 = vector.multi_reduction <maximumf>, %17, %cst_21 [1] : vector<8x8xf32> to vector<8xf32>
    %21 = vector.shape_cast %20 : vector<8xf32> to vector<8x1xf32>
    %22 = arith.maximumf %19, %21 : vector<8x1xf32>
    %23 = vector.broadcast %22 : vector<8x1xf32> to vector<8x8xf32>
    %24 = arith.subf %14, %23 : vector<8x8xf32>
    %25 = math.exp %24 : vector<8x8xf32>
    %26 = vector.broadcast %22 : vector<8x1xf32> to vector<8x8xf32>
    %27 = arith.subf %17, %26 : vector<8x8xf32>
    %28 = math.exp %27 : vector<8x8xf32>
    %cst_22 = arith.constant dense<0.000000e+00> : vector<8xf32>
    %29 = vector.multi_reduction <add>, %25, %cst_22 [1] : vector<8x8xf32> to vector<8xf32>
    %30 = vector.shape_cast %29 : vector<8xf32> to vector<8x1xf32>
    %cst_23 = arith.constant dense<0.000000e+00> : vector<8xf32>
    %31 = vector.multi_reduction <add>, %28, %cst_23 [1] : vector<8x8xf32> to vector<8xf32>
    %32 = vector.shape_cast %31 : vector<8xf32> to vector<8x1xf32>
    %33 = arith.addf %30, %32 : vector<8x1xf32>
    %34 = tpu.reciprocal %33 {approx = true} : vector<8x1xf32> -> vector<8x1xf32>
    %c0_24 = arith.constant 0 : index
    %c0_25 = arith.constant 0 : index
    %c0_26 = arith.constant 0 : index
    %c0_27 = arith.constant 0 : index
    %35 = vector.load %arg4[%c0_24, %c0_25, %c0_26, %c0_27] : memref<1x4x8x8xf32, #tpu.memory_space<vmem>>, vector<1x1x8x8xf32>
    %36 = vector.shape_cast %35 : vector<1x1x8x8xf32> to vector<8x8xf32>
    %37 = arith.truncf %36 : vector<8x8xf32> to vector<8x8xbf16>
    %c0_28 = arith.constant 0 : index
    %c0_29 = arith.constant 0 : index
    %c0_30 = arith.constant 0 : index
    %c0_31 = arith.constant 0 : index
    %38 = vector.load %arg6[%c0_28, %c0_29, %c0_30, %c0_31] : memref<1x4x8x8xf32, #tpu.memory_space<vmem>>, vector<1x1x8x8xf32>
    %39 = vector.shape_cast %38 : vector<1x1x8x8xf32> to vector<8x8xf32>
    %40 = arith.truncf %39 : vector<8x8xf32> to vector<8x8xbf16>
    %41 = arith.truncf %25 : vector<8x8xf32> to vector<8x8xbf16>
    %cst_32 = arith.constant dense<0.000000e+00> : vector<8x8xf32>
    %42 = tpu.matmul %41, %37, %cst_32 {dimension_numbers = #tpu.dot_dimension_numbers<[1], [0], [0], [1], [0, 0, 1, 1], [], []>} : vector<8x8xbf16>, vector<8x8xbf16>, vector<8x8xf32> -> vector<8x8xf32>
    %43 = arith.truncf %28 : vector<8x8xf32> to vector<8x8xbf16>
    %cst_33 = arith.constant dense<0.000000e+00> : vector<8x8xf32>
    %44 = tpu.matmul %43, %40, %cst_33 {dimension_numbers = #tpu.dot_dimension_numbers<[1], [0], [0], [1], [0, 0, 1, 1], [], []>} : vector<8x8xbf16>, vector<8x8xbf16>, vector<8x8xf32> -> vector<8x8xf32>
    %45 = arith.addf %42, %44 : vector<8x8xf32>
    %46 = vector.broadcast %34 : vector<8x1xf32> to vector<8x8xf32>
    %47 = arith.mulf %45, %46 : vector<8x8xf32>
    %c0_34 = arith.constant 0 : index
    %c1 = arith.constant 1 : index
    %c0_35 = arith.constant 0 : index
    %c0_36 = arith.constant 0 : index
    %48 = vector.load %arg2[%c0_34, %c1, %c0_35, %c0_36] : memref<1x4x8x8xbf16, #tpu.memory_space<vmem>>, vector<1x1x8x8xbf16>
    %49 = vector.shape_cast %48 : vector<1x1x8x8xbf16> to vector<8x8xbf16>
    %c0_37 = arith.constant 0 : index
    %c1_38 = arith.constant 1 : index
    %c0_39 = arith.constant 0 : index
    %c0_40 = arith.constant 0 : index
    %50 = vector.load %arg3[%c0_37, %c1_38, %c0_39, %c0_40] : memref<1x4x8x8xf32, #tpu.memory_space<vmem>>, vector<1x1x8x8xf32>
    %51 = vector.shape_cast %50 : vector<1x1x8x8xf32> to vector<8x8xf32>
    %52 = arith.truncf %51 : vector<8x8xf32> to vector<8x8xbf16>
    %c0_41 = arith.constant 0 : index
    %c1_42 = arith.constant 1 : index
    %c0_43 = arith.constant 0 : index
    %c0_44 = arith.constant 0 : index
    %53 = vector.load %arg5[%c0_41, %c1_42, %c0_43, %c0_44] : memref<1x4x8x8xf32, #tpu.memory_space<vmem>>, vector<1x1x8x8xf32>
    %54 = vector.shape_cast %53 : vector<1x1x8x8xf32> to vector<8x8xf32>
    %55 = arith.truncf %54 : vector<8x8xf32> to vector<8x8xbf16>
    %cst_45 = arith.constant dense<0.000000e+00> : vector<8x8xf32>
    %56 = tpu.matmul %49, %52, %cst_45 {dimension_numbers = #tpu.dot_dimension_numbers<[1], [1], [0], [0], [0, 0, 1, 0], [], []>} : vector<8x8xbf16>, vector<8x8xbf16>, vector<8x8xf32> -> vector<8x8xf32>
    %57 = vector.broadcast %1 : vector<1x8xf32> to vector<8x8xf32>
    %58 = arith.addf %56, %57 : vector<8x8xf32>
    %cst_46 = arith.constant dense<0.000000e+00> : vector<8x8xf32>
    %59 = tpu.matmul %49, %55, %cst_46 {dimension_numbers = #tpu.dot_dimension_numbers<[1], [1], [0], [0], [0, 0, 1, 0], [], []>} : vector<8x8xbf16>, vector<8x8xbf16>, vector<8x8xf32> -> vector<8x8xf32>
    %60 = vector.broadcast %3 : vector<1x8xf32> to vector<8x8xf32>
    %61 = arith.addf %59, %60 : vector<8x8xf32>
    %cst_47 = arith.constant dense<0xFF800000> : vector<8xf32>
    %62 = vector.multi_reduction <maximumf>, %58, %cst_47 [1] : vector<8x8xf32> to vector<8xf32>
    %63 = vector.shape_cast %62 : vector<8xf32> to vector<8x1xf32>
    %cst_48 = arith.constant dense<0xFF800000> : vector<8xf32>
    %64 = vector.multi_reduction <maximumf>, %61, %cst_48 [1] : vector<8x8xf32> to vector<8xf32>
    %65 = vector.shape_cast %64 : vector<8xf32> to vector<8x1xf32>
    %66 = arith.maximumf %63, %65 : vector<8x1xf32>
    %67 = vector.broadcast %66 : vector<8x1xf32> to vector<8x8xf32>
    %68 = arith.subf %58, %67 : vector<8x8xf32>
    %69 = math.exp %68 : vector<8x8xf32>
    %70 = vector.broadcast %66 : vector<8x1xf32> to vector<8x8xf32>
    %71 = arith.subf %61, %70 : vector<8x8xf32>
    %72 = math.exp %71 : vector<8x8xf32>
    %cst_49 = arith.constant dense<0.000000e+00> : vector<8xf32>
    %73 = vector.multi_reduction <add>, %69, %cst_49 [1] : vector<8x8xf32> to vector<8xf32>
    %74 = vector.shape_cast %73 : vector<8xf32> to vector<8x1xf32>
    %cst_50 = arith.constant dense<0.000000e+00> : vector<8xf32>
    %75 = vector.multi_reduction <add>, %72, %cst_50 [1] : vector<8x8xf32> to vector<8xf32>
    %76 = vector.shape_cast %75 : vector<8xf32> to vector<8x1xf32>
    %77 = arith.addf %74, %76 : vector<8x1xf32>
    %78 = tpu.reciprocal %77 {approx = true} : vector<8x1xf32> -> vector<8x1xf32>
    %c0_51 = arith.constant 0 : index
    %c1_52 = arith.constant 1 : index
    %c0_53 = arith.constant 0 : index
    %c0_54 = arith.constant 0 : index
    %79 = vector.load %arg4[%c0_51, %c1_52, %c0_53, %c0_54] : memref<1x4x8x8xf32, #tpu.memory_space<vmem>>, vector<1x1x8x8xf32>
    %80 = vector.shape_cast %79 : vector<1x1x8x8xf32> to vector<8x8xf32>
    %81 = arith.truncf %80 : vector<8x8xf32> to vector<8x8xbf16>
    %c0_55 = arith.constant 0 : index
    %c1_56 = arith.constant 1 : index
    %c0_57 = arith.constant 0 : index
    %c0_58 = arith.constant 0 : index
    %82 = vector.load %arg6[%c0_55, %c1_56, %c0_57, %c0_58] : memref<1x4x8x8xf32, #tpu.memory_space<vmem>>, vector<1x1x8x8xf32>
    %83 = vector.shape_cast %82 : vector<1x1x8x8xf32> to vector<8x8xf32>
    %84 = arith.truncf %83 : vector<8x8xf32> to vector<8x8xbf16>
    %85 = arith.truncf %69 : vector<8x8xf32> to vector<8x8xbf16>
    %cst_59 = arith.constant dense<0.000000e+00> : vector<8x8xf32>
    %86 = tpu.matmul %85, %81, %cst_59 {dimension_numbers = #tpu.dot_dimension_numbers<[1], [0], [0], [1], [0, 0, 1, 1], [], []>} : vector<8x8xbf16>, vector<8x8xbf16>, vector<8x8xf32> -> vector<8x8xf32>
    %87 = arith.truncf %72 : vector<8x8xf32> to vector<8x8xbf16>
    %cst_60 = arith.constant dense<0.000000e+00> : vector<8x8xf32>
    %88 = tpu.matmul %87, %84, %cst_60 {dimension_numbers = #tpu.dot_dimension_numbers<[1], [0], [0], [1], [0, 0, 1, 1], [], []>} : vector<8x8xbf16>, vector<8x8xbf16>, vector<8x8xf32> -> vector<8x8xf32>
    %89 = arith.addf %86, %88 : vector<8x8xf32>
    %90 = vector.broadcast %78 : vector<8x1xf32> to vector<8x8xf32>
    %91 = arith.mulf %89, %90 : vector<8x8xf32>
    %c0_61 = arith.constant 0 : index
    %c2 = arith.constant 2 : index
    %c0_62 = arith.constant 0 : index
    %c0_63 = arith.constant 0 : index
    %92 = vector.load %arg2[%c0_61, %c2, %c0_62, %c0_63] : memref<1x4x8x8xbf16, #tpu.memory_space<vmem>>, vector<1x1x8x8xbf16>
    %93 = vector.shape_cast %92 : vector<1x1x8x8xbf16> to vector<8x8xbf16>
    %c0_64 = arith.constant 0 : index
    %c2_65 = arith.constant 2 : index
    %c0_66 = arith.constant 0 : index
    %c0_67 = arith.constant 0 : index
    %94 = vector.load %arg3[%c0_64, %c2_65, %c0_66, %c0_67] : memref<1x4x8x8xf32, #tpu.memory_space<vmem>>, vector<1x1x8x8xf32>
    %95 = vector.shape_cast %94 : vector<1x1x8x8xf32> to vector<8x8xf32>
    %96 = arith.truncf %95 : vector<8x8xf32> to vector<8x8xbf16>
    %c0_68 = arith.constant 0 : index
    %c2_69 = arith.constant 2 : index
    %c0_70 = arith.constant 0 : index
    %c0_71 = arith.constant 0 : index
    %97 = vector.load %arg5[%c0_68, %c2_69, %c0_70, %c0_71] : memref<1x4x8x8xf32, #tpu.memory_space<vmem>>, vector<1x1x8x8xf32>
    %98 = vector.shape_cast %97 : vector<1x1x8x8xf32> to vector<8x8xf32>
    %99 = arith.truncf %98 : vector<8x8xf32> to vector<8x8xbf16>
    %cst_72 = arith.constant dense<0.000000e+00> : vector<8x8xf32>
    %100 = tpu.matmul %93, %96, %cst_72 {dimension_numbers = #tpu.dot_dimension_numbers<[1], [1], [0], [0], [0, 0, 1, 0], [], []>} : vector<8x8xbf16>, vector<8x8xbf16>, vector<8x8xf32> -> vector<8x8xf32>
    %101 = vector.broadcast %1 : vector<1x8xf32> to vector<8x8xf32>
    %102 = arith.addf %100, %101 : vector<8x8xf32>
    %cst_73 = arith.constant dense<0.000000e+00> : vector<8x8xf32>
    %103 = tpu.matmul %93, %99, %cst_73 {dimension_numbers = #tpu.dot_dimension_numbers<[1], [1], [0], [0], [0, 0, 1, 0], [], []>} : vector<8x8xbf16>, vector<8x8xbf16>, vector<8x8xf32> -> vector<8x8xf32>
    %104 = vector.broadcast %3 : vector<1x8xf32> to vector<8x8xf32>
    %105 = arith.addf %103, %104 : vector<8x8xf32>
    %cst_74 = arith.constant dense<0xFF800000> : vector<8xf32>
    %106 = vector.multi_reduction <maximumf>, %102, %cst_74 [1] : vector<8x8xf32> to vector<8xf32>
    %107 = vector.shape_cast %106 : vector<8xf32> to vector<8x1xf32>
    %cst_75 = arith.constant dense<0xFF800000> : vector<8xf32>
    %108 = vector.multi_reduction <maximumf>, %105, %cst_75 [1] : vector<8x8xf32> to vector<8xf32>
    %109 = vector.shape_cast %108 : vector<8xf32> to vector<8x1xf32>
    %110 = arith.maximumf %107, %109 : vector<8x1xf32>
    %111 = vector.broadcast %110 : vector<8x1xf32> to vector<8x8xf32>
    %112 = arith.subf %102, %111 : vector<8x8xf32>
    %113 = math.exp %112 : vector<8x8xf32>
    %114 = vector.broadcast %110 : vector<8x1xf32> to vector<8x8xf32>
    %115 = arith.subf %105, %114 : vector<8x8xf32>
    %116 = math.exp %115 : vector<8x8xf32>
    %cst_76 = arith.constant dense<0.000000e+00> : vector<8xf32>
    %117 = vector.multi_reduction <add>, %113, %cst_76 [1] : vector<8x8xf32> to vector<8xf32>
    %118 = vector.shape_cast %117 : vector<8xf32> to vector<8x1xf32>
    %cst_77 = arith.constant dense<0.000000e+00> : vector<8xf32>
    %119 = vector.multi_reduction <add>, %116, %cst_77 [1] : vector<8x8xf32> to vector<8xf32>
    %120 = vector.shape_cast %119 : vector<8xf32> to vector<8x1xf32>
    %121 = arith.addf %118, %120 : vector<8x1xf32>
    %122 = tpu.reciprocal %121 {approx = true} : vector<8x1xf32> -> vector<8x1xf32>
    %c0_78 = arith.constant 0 : index
    %c2_79 = arith.constant 2 : index
    %c0_80 = arith.constant 0 : index
    %c0_81 = arith.constant 0 : index
    %123 = vector.load %arg4[%c0_78, %c2_79, %c0_80, %c0_81] : memref<1x4x8x8xf32, #tpu.memory_space<vmem>>, vector<1x1x8x8xf32>
    %124 = vector.shape_cast %123 : vector<1x1x8x8xf32> to vector<8x8xf32>
    %125 = arith.truncf %124 : vector<8x8xf32> to vector<8x8xbf16>
    %c0_82 = arith.constant 0 : index
    %c2_83 = arith.constant 2 : index
    %c0_84 = arith.constant 0 : index
    %c0_85 = arith.constant 0 : index
    %126 = vector.load %arg6[%c0_82, %c2_83, %c0_84, %c0_85] : memref<1x4x8x8xf32, #tpu.memory_space<vmem>>, vector<1x1x8x8xf32>
    %127 = vector.shape_cast %126 : vector<1x1x8x8xf32> to vector<8x8xf32>
    %128 = arith.truncf %127 : vector<8x8xf32> to vector<8x8xbf16>
    %129 = arith.truncf %113 : vector<8x8xf32> to vector<8x8xbf16>
    %cst_86 = arith.constant dense<0.000000e+00> : vector<8x8xf32>
    %130 = tpu.matmul %129, %125, %cst_86 {dimension_numbers = #tpu.dot_dimension_numbers<[1], [0], [0], [1], [0, 0, 1, 1], [], []>} : vector<8x8xbf16>, vector<8x8xbf16>, vector<8x8xf32> -> vector<8x8xf32>
    %131 = arith.truncf %116 : vector<8x8xf32> to vector<8x8xbf16>
    %cst_87 = arith.constant dense<0.000000e+00> : vector<8x8xf32>
    %132 = tpu.matmul %131, %128, %cst_87 {dimension_numbers = #tpu.dot_dimension_numbers<[1], [0], [0], [1], [0, 0, 1, 1], [], []>} : vector<8x8xbf16>, vector<8x8xbf16>, vector<8x8xf32> -> vector<8x8xf32>
    %133 = arith.addf %130, %132 : vector<8x8xf32>
    %134 = vector.broadcast %122 : vector<8x1xf32> to vector<8x8xf32>
    %135 = arith.mulf %133, %134 : vector<8x8xf32>
    %c0_88 = arith.constant 0 : index
    %c3 = arith.constant 3 : index
    %c0_89 = arith.constant 0 : index
    %c0_90 = arith.constant 0 : index
    %136 = vector.load %arg2[%c0_88, %c3, %c0_89, %c0_90] : memref<1x4x8x8xbf16, #tpu.memory_space<vmem>>, vector<1x1x8x8xbf16>
    %137 = vector.shape_cast %136 : vector<1x1x8x8xbf16> to vector<8x8xbf16>
    %c0_91 = arith.constant 0 : index
    %c3_92 = arith.constant 3 : index
    %c0_93 = arith.constant 0 : index
    %c0_94 = arith.constant 0 : index
    %138 = vector.load %arg3[%c0_91, %c3_92, %c0_93, %c0_94] : memref<1x4x8x8xf32, #tpu.memory_space<vmem>>, vector<1x1x8x8xf32>
    %139 = vector.shape_cast %138 : vector<1x1x8x8xf32> to vector<8x8xf32>
    %140 = arith.truncf %139 : vector<8x8xf32> to vector<8x8xbf16>
    %c0_95 = arith.constant 0 : index
    %c3_96 = arith.constant 3 : index
    %c0_97 = arith.constant 0 : index
    %c0_98 = arith.constant 0 : index
    %141 = vector.load %arg5[%c0_95, %c3_96, %c0_97, %c0_98] : memref<1x4x8x8xf32, #tpu.memory_space<vmem>>, vector<1x1x8x8xf32>
    %142 = vector.shape_cast %141 : vector<1x1x8x8xf32> to vector<8x8xf32>
    %143 = arith.truncf %142 : vector<8x8xf32> to vector<8x8xbf16>
    %cst_99 = arith.constant dense<0.000000e+00> : vector<8x8xf32>
    %144 = tpu.matmul %137, %140, %cst_99 {dimension_numbers = #tpu.dot_dimension_numbers<[1], [1], [0], [0], [0, 0, 1, 0], [], []>} : vector<8x8xbf16>, vector<8x8xbf16>, vector<8x8xf32> -> vector<8x8xf32>
    %145 = vector.broadcast %1 : vector<1x8xf32> to vector<8x8xf32>
    %146 = arith.addf %144, %145 : vector<8x8xf32>
    %cst_100 = arith.constant dense<0.000000e+00> : vector<8x8xf32>
    %147 = tpu.matmul %137, %143, %cst_100 {dimension_numbers = #tpu.dot_dimension_numbers<[1], [1], [0], [0], [0, 0, 1, 0], [], []>} : vector<8x8xbf16>, vector<8x8xbf16>, vector<8x8xf32> -> vector<8x8xf32>
    %148 = vector.broadcast %3 : vector<1x8xf32> to vector<8x8xf32>
    %149 = arith.addf %147, %148 : vector<8x8xf32>
    %cst_101 = arith.constant dense<0xFF800000> : vector<8xf32>
    %150 = vector.multi_reduction <maximumf>, %146, %cst_101 [1] : vector<8x8xf32> to vector<8xf32>
    %151 = vector.shape_cast %150 : vector<8xf32> to vector<8x1xf32>
    %cst_102 = arith.constant dense<0xFF800000> : vector<8xf32>
    %152 = vector.multi_reduction <maximumf>, %149, %cst_102 [1] : vector<8x8xf32> to vector<8xf32>
    %153 = vector.shape_cast %152 : vector<8xf32> to vector<8x1xf32>
    %154 = arith.maximumf %151, %153 : vector<8x1xf32>
    %155 = vector.broadcast %154 : vector<8x1xf32> to vector<8x8xf32>
    %156 = arith.subf %146, %155 : vector<8x8xf32>
    %157 = math.exp %156 : vector<8x8xf32>
    %158 = vector.broadcast %154 : vector<8x1xf32> to vector<8x8xf32>
    %159 = arith.subf %149, %158 : vector<8x8xf32>
    %160 = math.exp %159 : vector<8x8xf32>
    %cst_103 = arith.constant dense<0.000000e+00> : vector<8xf32>
    %161 = vector.multi_reduction <add>, %157, %cst_103 [1] : vector<8x8xf32> to vector<8xf32>
    %162 = vector.shape_cast %161 : vector<8xf32> to vector<8x1xf32>
    %cst_104 = arith.constant dense<0.000000e+00> : vector<8xf32>
    %163 = vector.multi_reduction <add>, %160, %cst_104 [1] : vector<8x8xf32> to vector<8xf32>
    %164 = vector.shape_cast %163 : vector<8xf32> to vector<8x1xf32>
    %165 = arith.addf %162, %164 : vector<8x1xf32>
    %166 = tpu.reciprocal %165 {approx = true} : vector<8x1xf32> -> vector<8x1xf32>
    %c0_105 = arith.constant 0 : index
    %c3_106 = arith.constant 3 : index
    %c0_107 = arith.constant 0 : index
    %c0_108 = arith.constant 0 : index
    %167 = vector.load %arg4[%c0_105, %c3_106, %c0_107, %c0_108] : memref<1x4x8x8xf32, #tpu.memory_space<vmem>>, vector<1x1x8x8xf32>
    %168 = vector.shape_cast %167 : vector<1x1x8x8xf32> to vector<8x8xf32>
    %169 = arith.truncf %168 : vector<8x8xf32> to vector<8x8xbf16>
    %c0_109 = arith.constant 0 : index
    %c3_110 = arith.constant 3 : index
    %c0_111 = arith.constant 0 : index
    %c0_112 = arith.constant 0 : index
    %170 = vector.load %arg6[%c0_109, %c3_110, %c0_111, %c0_112] : memref<1x4x8x8xf32, #tpu.memory_space<vmem>>, vector<1x1x8x8xf32>
    %171 = vector.shape_cast %170 : vector<1x1x8x8xf32> to vector<8x8xf32>
    %172 = arith.truncf %171 : vector<8x8xf32> to vector<8x8xbf16>
    %173 = arith.truncf %157 : vector<8x8xf32> to vector<8x8xbf16>
    %cst_113 = arith.constant dense<0.000000e+00> : vector<8x8xf32>
    %174 = tpu.matmul %173, %169, %cst_113 {dimension_numbers = #tpu.dot_dimension_numbers<[1], [0], [0], [1], [0, 0, 1, 1], [], []>} : vector<8x8xbf16>, vector<8x8xbf16>, vector<8x8xf32> -> vector<8x8xf32>
    %175 = arith.truncf %160 : vector<8x8xf32> to vector<8x8xbf16>
    %cst_114 = arith.constant dense<0.000000e+00> : vector<8x8xf32>
    %176 = tpu.matmul %175, %172, %cst_114 {dimension_numbers = #tpu.dot_dimension_numbers<[1], [0], [0], [1], [0, 0, 1, 1], [], []>} : vector<8x8xbf16>, vector<8x8xbf16>, vector<8x8xf32> -> vector<8x8xf32>
    %177 = arith.addf %174, %176 : vector<8x8xf32>
    %178 = vector.broadcast %166 : vector<8x1xf32> to vector<8x8xf32>
    %179 = arith.mulf %177, %178 : vector<8x8xf32>
    %180 = tpu.concatenate %47, %91, %135, %179 in 1 : vector<8x8xf32>, vector<8x8xf32>, vector<8x8xf32>, vector<8x8xf32> -> vector<8x32xf32>
    %c0_115 = arith.constant 0 : index
    %c0_116 = arith.constant 0 : index
    %c0_117 = arith.constant 0 : index
    %181 = vector.load %arg9[%c0_115, %c0_116, %c0_117] : memref<1x8x32xf32, #tpu.memory_space<vmem>>, vector<1x8x32xf32>
    %182 = vector.shape_cast %181 : vector<1x8x32xf32> to vector<8x32xf32>
    %183 = vector.shape_cast %180 : vector<8x32xf32> to vector<1x8x32xf32>
    tpu.vector_store %arg9[%c0_115, %c0_116, %c0_117], %183 {strides = array<i32>} : memref<1x8x32xf32, #tpu.memory_space<vmem>>, vector<1x8x32xf32>,
    return
  }
  func.func @transform_0(%arg0: i32, %arg1: i32) -> (i32, i32, i32, i32) {
    %c0_i32 = arith.constant 0 : i32
    %c0_i32_0 = arith.constant 0 : i32
    %c0_i32_1 = arith.constant 0 : i32
    return %arg0, %arg1, %c0_i32, %c0_i32_0 : i32, i32, i32, i32
  }
  func.func @transform_1(%arg0: i32, %arg1: i32) -> (i32, i32, i32, i32) {
    %c0_i32 = arith.constant 0 : i32
    %c0_i32_0 = arith.constant 0 : i32
    %c0_i32_1 = arith.constant 0 : i32
    return %arg0, %arg1, %c0_i32, %c0_i32_0 : i32, i32, i32, i32
  }
  func.func @transform_2(%arg0: i32, %arg1: i32) -> (i32, i32, i32, i32) {
    %c0_i32 = arith.constant 0 : i32
    %c0_i32_0 = arith.constant 0 : i32
    %c0_i32_1 = arith.constant 0 : i32
    return %arg0, %arg1, %c0_i32, %c0_i32_0 : i32, i32, i32, i32
  }
  func.func @transform_3(%arg0: i32, %arg1: i32) -> (i32, i32, i32, i32) {
    %c0_i32 = arith.constant 0 : i32
    %c0_i32_0 = arith.constant 0 : i32
    %c0_i32_1 = arith.constant 0 : i32
    return %arg0, %arg1, %c0_i32, %c0_i32_0 : i32, i32, i32, i32
  }
  func.func @transform_4(%arg0: i32, %arg1: i32) -> (i32, i32, i32, i32) {
    %c0_i32 = arith.constant 0 : i32
    %c0_i32_0 = arith.constant 0 : i32
    %c0_i32_1 = arith.constant 0 : i32
    return %arg0, %arg1, %c0_i32, %c0_i32_0 : i32, i32, i32, i32
  }
  func.func @transform_5(%arg0: i32, %arg1: i32) -> (i32, i32, i32, i32) {
    %c0_i32 = arith.constant 0 : i32
    %c0_i32_0 = arith.constant 0 : i32
    %c0_i32_1 = arith.constant 0 : i32
    %c0_i32_2 = arith.constant 0 : i32
    return %arg0, %c0_i32, %c0_i32_0, %c0_i32_1 : i32, i32, i32, i32
  }
  func.func @transform_6(%arg0: i32, %arg1: i32) -> (i32, i32, i32, i32) {
    %c0_i32 = arith.constant 0 : i32
    %c0_i32_0 = arith.constant 0 : i32
    %c0_i32_1 = arith.constant 0 : i32
    %c0_i32_2 = arith.constant 0 : i32
    return %arg0, %c0_i32, %c0_i32_0, %c0_i32_1 : i32, i32, i32, i32
  }
  func.func @transform_7(%arg0: i32, %arg1: i32) -> (i32, i32, i32) {
    %c0_i32 = arith.constant 0 : i32
    %c0_i32_0 = arith.constant 0 : i32
    return %arg0, %c0_i32, %arg1 : i32, i32, i32
  }
}

</mosaic_0001>

<bundles_post_ra>
// kernel: bert_cache_attention_forward.2
= control target key start
LH: loop header
LB: loop body
LE: loop exit
PB: predicated region body
PF: predicated region fallthrough
CT: control target
= control target key end

     0   :  { %11 = vsyncpa [#allocation3], 0  ;;  %s1218_s0 = inlined_call_operand.hbm [shape: f32[2,8,32], index: 0, kind: input, shape index: {}]   ;;  %s1219_s1 = inlined_call_operand.hbm [shape: bf16[32,96], index: 1, kind: input, shape index: {}]   ;;  %s1220_s2 = inlined_call_operand.hbm [shape: f32[1,96], index: 2, kind: input, shape index: {}]   ;;  %s1221_s3 = inlined_call_operand.vmem [shape: bf16[2,4,8,8], index: 3, kind: output, shape index: {0}]   ;;  %s1222_s4 = inlined_call_operand.vmem [shape: f32[2,4,8,8], index: 4, kind: output, shape index: {1}]   ;;  %s1223_s5 = inlined_call_operand.vmem [shape: f32[2,4,8,8], index: 5, kind: output, shape index: {2}]  }
   0x1   :  { %13 = vsyncpa [#allocation3 + $0x1], 0 }
   0x2   :  { %14 = vsyncpa [#allocation5], 0  ;;  %s999_s18 = smov 0   ;;  %s1001_s19 = smov 0  }
   0x3   :  { %s1003_s20 = smov 0   ;;  %s1005_s21 = smov 0  }
   0x4   :  { %s1007_s22 = smov 0   ;;  %s1009_s23 = smov 0  }
   0x5 LB: > { %s667_s24 = sadd.s32 4294967295, %s949_s23   ;;  %p54_p0 = scmp.ne.s32.totalorder %s933_s19, %s929_s18  ;;  %s949_s23 = sphi %s1009_s23, %s20_s23   ;;  %s945_s22 = sphi %s1007_s22, %s1240_s22   ;;  %s941_s21 = sphi %s1005_s21, %s1239_s21   ;;  %s937_s20 = sphi %s1003_s20, %s1238_s20   ;;  %s933_s19 = sphi %s1001_s19, %s1237_s19   ;;  %s929_s18 = sphi %s999_s18, %s1236_s18  }
   0x6   : > { %p1029_p1 = scmp.eq.s32.totalorder %s667_s24, 0  ;;  %p669_p2 = scmp.ge.s32.totalorder %s949_s23, 1 }
   0x7   : > { %p191_p3 = scmp.lt.s32.totalorder %s949_s23, 3  ;;  %s951_s28 = smov [#allocation4]  }
   0x8   : > { %s1228_s25 = scalar_select %p1029_p1, 1, 0 }
   0x9   : > { %p1037_p4 = por %p1029_p1, %p54_p0  ;;  %p1041_p5 = pnand %p669_p2, %p191_p3 }
   0xa   : > { %s203_s29 = sshll.u32 %s951_s28, 4  ;;  %s952_s6 = smov [#allocation6]   ;;  %s204_s29 = int_to_ptr.vmem [resolvable:$true] %s203_s29 }
   0xb   : > { %s1229_s26 = scalar_select %p1037_p4, 1, 0 }
   0xc   : > { %s1230_s27 = scalar_select %p1041_p5, 1, 0 }
   0xd   : > { %p726_p6 = pneg %p1041_p5  ;;  %s217_s7 = sshll.u32 %s952_s6, 4  ;;  %s1053_s7 = int_to_ptr.vmem [resolvable:$true] %s217_s7 }
   0xe   : > { %s809_s10 = scalar_lea.hbm %s1219_s1, 256 }
   0xf   : > { %p1049_p7 = pnand %p726_p6, %p1029_p1  ;;  %p810_p8 = scmp.ne.s32.totalorder %s1219_s1, %s809_s10 }
  0x10   : > { %p816_p12 = scmp.lt.u32.totalorder %s809_s10, %s1219_s1 }
  0x11   : > { %p811_p9 = pneg %p1049_p7 }
  0x13   : > { %p812_p10 = pnand %p811_p9, %p810_p8 }
  0x15   : > { %p813_p11 = pneg %p812_p10 }
  0x17   : > { %p818_p13 = pnand %p816_p12, %p813_p11 }
  0x19   : > { %821 = shalt.err (!%p818_p13)
}
  0x1a   : > { %s822_s15 = scalar_lea.vmem %s204_s29, 256  ;;  %p830_p6 = scmp.lt.s32.totalorder %s204_s29, %s204_s29 }
  0x1b   : > { %p823_p0 = scmp.ne.s32.totalorder %s204_s29, %s822_s15  ;;  %p831_p1 = scmp.lt.s32.totalorder %s822_s15, %s822_s15 }
  0x1d   : > { %p825_p2 = pnand %p823_p0, %p811_p9  ;;  %p832_p4 = por %p831_p1, %p830_p6 }
  0x1f   : > { %p826_p3 = pneg %p825_p2 }
  0x21   : > { %p833_p5 = pnand %p832_p4, %p826_p3 }
  0x23   : > { %836 = shalt.err (!%p833_p5)
}
  0x24   : > { %s953_s16 = smov 64   ;;  %s954_s17 = smov 4  }
  0x25   : > { %729 = dma.hbm_to_vmem [thread:$0]  (!%p1049_p7), %s1219_s1, 256, %s204_s29, [#allocation5], %s953_s16, %s953_s16, %s954_s17  }
  0x26   : > { %s837_s8 = scalar_lea.hbm %s1220_s2, 16 }
  0x27   : > { %p838_p8 = scmp.ne.s32.totalorder %s1220_s2, %s837_s8  ;;  %p844_p5 = scmp.lt.u32.totalorder %s837_s8, %s1220_s2 }
  0x29   : > { %p840_p1 = pnand %p838_p8, %p811_p9 }
  0x2b   : > { %p841_p4 = pneg %p840_p1 }
  0x2d   : > { %p846_p10 = pnand %p844_p5, %p841_p4 }
  0x2f   : > { %849 = shalt.err (!%p846_p10)
}
  0x30   : > { %s850_s29 = scalar_lea.vmem %s1053_s7, 16  ;;  %s857_s13 = scalar_lea.vmem %s1053_s7, 32 }
  0x31   : > { %p851_p11 = scmp.ne.s32.totalorder %s1053_s7, %s850_s29  ;;  %p858_p0 = scmp.lt.s32.totalorder %s1053_s7, %s1053_s7 }
  0x32   : > { %p859_p2 = scmp.lt.s32.totalorder %s857_s13, %s850_s29 }
  0x33   : > { %p853_p12 = pnand %p851_p11, %p811_p9 }
  0x34   : > { %p860_p3 = por %p859_p2, %p858_p0 }
  0x35   : > { %p854_p13 = pneg %p853_p12 }
  0x37   : > { %p861_p6 = pnand %p860_p3, %p854_p13 }
  0x39   : > { %864 = shalt.err (!%p861_p6)
}
  0x3a   : > { %732 = dma.hbm_to_vmem [thread:$0]  (!%p1049_p7), %s1220_s2, 16, %s1053_s7, [#allocation5]  }
  0x3b   : > { %s32_s16 = sadd.s32 1, %s945_s22  ;;  %s41_s17 = sadd.s32 1, %s937_s20 }
  0x3c   : > { %p34_p9 = scmp.ge.s32.totalorder %s32_s16, 2  ;;  %p48_p8 = scmp.ne.s32.totalorder %s937_s20, %s933_s19 }
  0x3d   : > { %p49_p1 = scmp.eq.s32.totalorder %s949_s23, 0  ;;  %p739_p4 = scmp.lt.s32.totalorder %s949_s23, 2 }
  0x3e   : > { %s1242_s16 = smov (%p34_p9, %s32_s16), 0  ;;  %s228_s30 = sand.u32 1, %s937_s20  }
  0x3f   : > { %p50_p5 = por %p49_p1, %p48_p8  ;;  %s36_s18 = ssub.s32 %s945_s22, %s1242_s16 }
  0x40   : > { %p39_p10 = scmp.eq.s32.totalorder %s36_s18, 0  ;;  %s673_s24 = sshll.u32 %s228_s30, 3 }
  0x41   : > { %s674_s28 = sshll.u32 %s945_s22, 7  ;;  %s232_s10 = scalar_lea.vmem [#allocation2], %s673_s24 }
  0x42   : > { %s1116_s6 = scalar_select %p39_p10, %s937_s20, %s41_s17  }
  0x43   : > { %s1121_s9 = scalar_lea.hbm %s1218_s0, %s674_s28  ;;  %s240_s11 = sshll.u32 %s232_s10, 4  ;;  %s1123_s11 = int_to_ptr.vmem [resolvable:$true] %s240_s11 }
  0x44   : > { %p1127_p7 = pnand %p739_p4, %p50_p5  ;;  %s229_s29 = scalar_lea.sflag [#allocation3], %s228_s30 }
  0x45   : > { %s865_s13 = scalar_lea.hbm %s1121_s9, 128  ;;  %s870_s17 = scalar_lea.hbm %s1218_s0, 256 }
  0x46   : > { %p866_p11 = scmp.ne.s32.totalorder %s1121_s9, %s865_s13  ;;  %p867_p12 = pneg %p1127_p7 }
  0x47   : > { %p871_p2 = scmp.lt.u32.totalorder %s1121_s9, %s1218_s0  ;;  %p872_p3 = scmp.lt.u32.totalorder %s870_s17, %s865_s13 }
  0x48   : > { %p868_p13 = pnand %p867_p12, %p866_p11  ;;  %p874_p9 = scmp.lt.u32.totalorder %s865_s13, %s1121_s9 }
  0x49   : > { %p873_p6 = por %p872_p3, %p871_p2 }
  0x4a   : > { %p869_p0 = pneg %p868_p13 }
  0x4b   : > { %p875_p8 = por %p874_p9, %p873_p6 }
  0x4d   : > { %p876_p1 = pnand %p875_p8, %p869_p0 }
  0x4f   : > { %879 = shalt.err (!%p876_p1)
}
  0x50   : > { %s880_s30 = scalar_lea.vmem %s1123_s11, 128  ;;  %s955_s28 = smov [#allocation2]  }
  0x51   : > { %p881_p4 = scmp.ne.s32.totalorder %s1123_s11, %s880_s30  ;;  %s885_s8 = sshll.u32 %s955_s28, 4  ;;  %s886_s8 = int_to_ptr.vmem [resolvable:$false] %s885_s8 }
  0x52   : > { %s887_s7 = scalar_lea.vmem %s886_s8, 256  ;;  %p888_p11 = scmp.lt.s32.totalorder %s1123_s11, %s886_s8 }
  0x53   : > { %p883_p5 = pnand %p881_p4, %p867_p12  ;;  %p889_p13 = scmp.lt.s32.totalorder %s887_s7, %s880_s30 }
  0x55   : > { %p884_p10 = pneg %p883_p5  ;;  %p890_p2 = por %p889_p13, %p888_p11 }
  0x57   : > { %p891_p3 = pnand %p890_p2, %p884_p10 }
  0x59   : > { %894 = shalt.err (!%p891_p3)
}
  0x5a   : > { %736 = dma.hbm_to_vmem [thread:$0]  (!%p1127_p7), %s1121_s9, 128, %s1123_s11, %s229_s29  }
  0x5b   : > { %p1233_p0 = scmp.ne.s32.totalorder %s1230_s27, 0 }
  0x5c   : > { %s251_s10 = sand.u32 (!%p1233_p0), 1, %s933_s19   ;;  %p1234_p12 = scmp.ne.s32.totalorder (!%p1233_p0), %s1229_s26, 0 }
  0x5d   : > { %249 = sbr.rel (%p1233_p0) target bundleno = 463 (0x1cf), region = 32  ;;  %s676_s13 = sshll.u32 (!%p1233_p0), %s251_s10, 3 }
  0x5e   : > { %s252_s14 = scalar_lea.sflag (!%p1233_p0), [#allocation3], %s251_s10  ;;  %s255_s15 = scalar_lea.vmem (!%p1233_p0), [#allocation2], %s676_s13 }
  0x64   : > { %920 = dma.done.wait (%p1234_p12), %s252_s14, 128  }
  0x65   : > { %922 = vsyncadd (%p1234_p12), %s252_s14, 4294967168  ;;  %p1235_p6 = scmp.ne.s32.totalorder %s1228_s25, 0 }
  0x67   : > { %924 = dma.done.wait (%p1235_p6), [#allocation5], 272  }
  0x68   : > { %926 = vsyncadd (%p1235_p6), [#allocation5], 4294967024  ;;  %v956_v0 = vmov 0.0   ;;  %vm957_vm0 = vmmov 0   ;;  %v807_v1 = vld [vmem:[#allocation4] sm:$0xff]   ;;  %v808_v2 = vld [vmem:[#allocation4 + $0x8] sm:$0xff]  }
  0x69   : > { %708 = vmatprep.subr.bf16.mxu0 %v956_v0  ;;  %712 = vmatprep.mubr.msk.bf16.mxu0 %vm957_vm0, %v956_v0  ;;  %v334_v3 = vld [vmem:[%s255_s15] sm:$0xff]  ;;  %vm359_vm1 = vcmask 261120   ;;  %p309_p7 = scmp.lt.s32.totalorder %s941_s21, 1  ;;  %vm404_vm2 = vcmask 60416   ;;  %s958_s11 = smov 88   ;;  %vm410_vm3 = vcmask 64512  }
  0x6a   : > { %709 = vmatpush3.bf16.msra.mxu0 %v807_v1  ;;  %v335_v4 = vpack.c.bf16 %v334_v3, %v334_v3  ;;  %v685_v5 = vld [vmem:[#allocation6] ss:$0 sm:$0xff]  ;;  %s959_s12 = smov 96   ;;  %s960_s29 = smov 48  }
  0x6b   : > { %710 = vmatprep.subr.bf16.mxu0 %v956_v0  ;;  %s1244_s21 = smov (!%p309_p7, %s941_s21), 1  ;;  %s961_s17 = smov 64  }
  0x6c   : > { %s701_s25 = sshll.u32 %s1244_s21, 4  ;;  %s962_s18 = smov 56  }
  0x6d   : > { %s1175_s9 = scalar_lea.vmem %s1221_s3, %s701_s25  ;;  %s963_s24 = smov 120  }
  0x6e   : > { %711 = vmatpush3.bf16.msra.mxu0 %v808_v2  ;;  %s964_s30 = smov 80   ;;  %s965_s28 = smov 112  }
  0x6f   : > { %s966_s8 = smov 104   ;;  %s967_s7 = smov 72  }
  0x70   : > { %s968_s10 = smov 40   ;;  %s702_s13 = sshll.u32 %s1244_s21, 5 }
  0x71   : > { %713 = vmatmul.mubr.msk.bf16.vlgmr.msra.gmra.mrb[0].mxu0 %vm359_vm1, %v335_v4  ;;  %s324_s25 = scalar_lea.vmem %s1222_s4, %s702_s13 }
 0x144   : > { %v397_v6 = vpop.f32.mrb[0].mxu0 }
 0x145   : > { %v398_v7 = vadd.f32 %v685_v5, %v397_v6  ;;  %v714_v8 = vpop.f32.mrb[1].mxu0 }
 0x146   : > { %v400_v9 = vpop.f32.mrb[2].mxu0 }
 0x147   : > { %424 = vrot.lane.b32.xlu1 %v398_v7, %s958_s11  ;;  %407 = vrot.lane.b32.xlu0 %v398_v7, %s959_s12  ;;  %v715_v10 = vpop.f32.mrb[3].mxu0  ;;  %v403_v11 = vpack.c.bf16 %v398_v7, %v398_v7  ;;  %s332_s11 = scalar_lea.vmem %s1223_s5, %s702_s13 }
 0x149   : > { %405 = vst.msk [vmem:[%s1175_s9] sm:$0xf] %vm404_vm2, %v403_v11 }
 0x14b   : > { %444 = vrot.lane.b32.xlu1 %v398_v7, %s960_s29  ;;  %412 = vrot.lane.b32.xlu0 %v398_v7, %s961_s17 }
 0x14f   : > { %429 = vrot.lane.b32.xlu0 %v398_v7, %s962_s18  ;;  %419 = vrot.lane.b32.xlu1 %v403_v11, %s963_s24 }
 0x153   : > { %439 = vrot.lane.b32.xlu0 %v398_v7, %s964_s30  ;;  %434 = vrot.lane.b32.xlu1 %v403_v11, %s965_s28 }
 0x157   : > { %449 = vrot.lane.b32.xlu0 %v403_v11, %s966_s8  ;;  %454 = vrot.lane.b32.xlu1 %v398_v7, %s967_s7 }
 0x15b   : > { %459 = vrot.lane.b32.xlu0 %v398_v7, %s968_s10 }
 0x1b9   : > { %v425_v12 = vpop.permute.xlu1 %424  ;;  %v408_v13 = vpop.permute.xlu0 %407 }
 0x1ba   : > { %691 = vst.msk [vmem:[%s324_s25 + $0x8] sm:$0xff] %vm410_vm3, %v425_v12  ;;  %411 = vst.msk [vmem:[%s324_s25] sm:$0xff] %vm410_vm3, %v408_v13 }
 0x1bd   : > { %v445_v14 = vpop.permute.xlu1 %444  ;;  %v413_v15 = vpop.permute.xlu0 %412 }
 0x1be   : > { %695 = vst.msk [vmem:[%s332_s11 + $0x10] sm:$0xff] %vm410_vm3, %v445_v14  ;;  %415 = vst.msk [vmem:[%s332_s11] sm:$0xff] %vm410_vm3, %v413_v15 }
 0x1c1   : > { %v430_v16 = vpop.permute.xlu0 %429  ;;  %v420_v17 = vpop.permute.xlu1 %419 }
 0x1c2   : > { %692 = vst.msk [vmem:[%s332_s11 + $0x8] sm:$0xff] %vm410_vm3, %v430_v16 }
 0x1c3   : > { %690 = vst.msk [vmem:[%s1175_s9 + $0x4] sm:$0xf] %vm404_vm2, %v420_v17 }
 0x1c5   : > { %v440_v18 = vpop.permute.xlu0 %439  ;;  %v435_v19 = vpop.permute.xlu1 %434 }
 0x1c6   : > { %694 = vst.msk [vmem:[%s324_s25 + $0x10] sm:$0xff] %vm410_vm3, %v440_v18 }
 0x1c7   : > { %693 = vst.msk [vmem:[%s1175_s9 + $0x8] sm:$0xf] %vm404_vm2, %v435_v19 }
 0x1c9   : > { %v450_v20 = vpop.permute.xlu0 %449  ;;  %v455_v21 = vpop.permute.xlu1 %454 }
 0x1ca   : > { %696 = vst.msk [vmem:[%s1175_s9 + $0xc] sm:$0xf] %vm404_vm2, %v450_v20 }
 0x1cb   : > { %697 = vst.msk [vmem:[%s324_s25 + $0x18] sm:$0xff] %vm410_vm3, %v455_v21 }
 0x1cd   : > { %v460_v22 = vpop.permute.xlu0 %459 }
 0x1ce   : > { %698 = vst.msk [vmem:[%s332_s11 + $0x18] sm:$0xff] %vm410_vm3, %v460_v22 }
 0x1cf PF: > { %s20_s23 = sadd.s32 1, %s949_s23   ;;  %s1236_s18 = smov %s933_s19 }
 0x1d0   : > { %p17_p9 = scmp.ge.s32.totalorder %s20_s23, 4   ;;  %s1237_s19 = smov %s937_s20 }
 0x1d1   : > { %s1238_s20 = smov %s1116_s6  ;;  %s1239_s21 = smov %s945_s22 }
 0x1d2   : > { %s1240_s22 = smov %s1242_s16  ;;  %19 = sbr.rel (!%p17_p9) target bundleno = 5 (0x5), region = 113 }
 0x1d9   :  { %535 = vsyncpa [#allocation3], 1 }
 0x1da   :  { %537 = vsyncpa [#allocation3 + $0x1], 1 }
 0x1db   :  { %538 = vsyncpa [#allocation5], 1 }

// kernel: bert_cache_attention_forward.3
= control target key start
LH: loop header
LB: loop body
LE: loop exit
PB: predicated region body
PF: predicated region fallthrough
CT: control target
= control target key end

     0   :  { %12 = vsyncpa [#allocation3], 0  ;;  %s2408_s0 = inlined_call_operand.vmem [shape: bf16[2,4,8,8], index: 0, kind: input, shape index: {}]   ;;  %s2409_s1 = inlined_call_operand.vmem [shape: f32[2,4,8,8], index: 1, kind: input, shape index: {}]   ;;  %s2410_s2 = inlined_call_operand.hbm [shape: f32[2,4,8,8], index: 2, kind: input, shape index: {}]   ;;  %s2411_s3 = inlined_call_operand.vmem [shape: f32[2,4,8,8], index: 3, kind: input, shape index: {}]   ;;  %s2412_s4 = inlined_call_operand.vmem [shape: f32[2,4,8,8], index: 4, kind: input, shape index: {}]   ;;  %s2413_s5 = inlined_call_operand.vmem [shape: f32[2,1,1,8], index: 5, kind: input, shape index: {}]   ;;  %s2414_s6 = inlined_call_operand.vmem [shape: f32[2,1,1,8], index: 6, kind: input, shape index: {}]   ;;  %s2415_s7 = inlined_call_operand.hbm [shape: f32[2,8,32], index: 7, kind: output, shape index: {}]  }
   0x1   :  { %14 = vsyncpa [#allocation3 + $0x1], 0 }
   0x2   :  { %15 = vsyncpa [#allocation4], 0 }
   0x3   :  { %17 = vsyncpa [#allocation4 + $0x1], 0  ;;  %s2042_s24 = smov 0   ;;  %s2044_s25 = smov 0  }
   0x4   :  { %s2046_s26 = smov 0   ;;  %s2048_s27 = smov 0  }
   0x5   :  { %s2050_s28 = smov 0   ;;  %s2052_s29 = smov 0  }
   0x6 LB: > { %s1582_s30 = sadd.s32 4294967295, %s1991_s29   ;;  %s1583_s8 = sadd.s32 4294967294, %s1991_s29   ;;  %s1991_s29 = sphi %s2052_s29, %s23_s29   ;;  %s1987_s28 = sphi %s2050_s28, %s2430_s28   ;;  %s1983_s27 = sphi %s2048_s27, %s2429_s27   ;;  %s1979_s26 = sphi %s2046_s26, %s2428_s26   ;;  %s1975_s25 = sphi %s2044_s25, %s2427_s25   ;;  %s1971_s24 = sphi %s2042_s24, %s2426_s24  }
   0x7   : > { %s35_s9 = sadd.s32 1, %s1987_s28  ;;  %s100_s10 = sadd.s32 1, %s1979_s26 }
   0x8   : > { %p37_p0 = scmp.ge.s32.totalorder %s35_s9, 2  ;;  %p107_p1 = scmp.ne.s32.totalorder %s1979_s26, %s1975_s25 }
   0x9   : > { %p108_p2 = scmp.eq.s32.totalorder %s1991_s29, 0  ;;  %p113_p3 = scmp.ne.s32.totalorder %s1975_s25, %s1971_s24 }
   0xa   : > { %s2432_s9 = smov (%p37_p0, %s35_s9), 0  ;;  %p114_p5 = scmp.eq.s32.totalorder %s1582_s30, 0 }
   0xb   : > { %p2083_p4 = por %p108_p2, %p107_p1  ;;  %s95_s12 = ssub.s32 %s1987_s28, %s2432_s9 }
   0xc   : > { %p247_p6 = scmp.eq.s32.totalorder %s1582_s30, 1  ;;  %p98_p7 = scmp.eq.s32.totalorder %s95_s12, 0 }
   0xd   : > { %p2089_p8 = por %p114_p5, %p113_p3  ;;  %p253_p10 = scmp.eq.s32.totalorder %s1583_s8, 1 }
   0xe   : > { %p2093_p9 = por %p247_p6, %p107_p1  ;;  %p1798_p13 = scmp.lt.s32.totalorder %s1991_s29, 2 }
   0xf   : > { %s2098_s15 = scalar_select %p98_p7, %s1979_s26, %s100_s10  }
  0x10   : > { %s2419_s14 = scalar_select %p2093_p9, 1, 0 }
  0x11   : > { %p2100_p11 = por %p253_p10, %p113_p3  ;;  %s299_s17 = sand.u32 1, %s1979_s26  }
  0x12   : > { %s1586_s18 = sshll.u32 %s299_s17, 5  ;;  %s1637_s19 = sshll.u32 %s1987_s28, 9 }
  0x13   : > { %s2420_s16 = scalar_select %p2100_p11, 1, 0 }
  0x14   : > { %s2111_s22 = scalar_lea.hbm %s2410_s2, %s1637_s19  ;;  %s303_s23 = scalar_lea.vmem [#allocation2], %s1586_s18 }
  0x15   : > { %s312_s30 = sshll.u32 %s303_s23, 4  ;;  %p2117_p0 = pnand %p1798_p13, %p2083_p4  ;;  %s2113_s30 = int_to_ptr.vmem [resolvable:$true] %s312_s30 }
  0x16   : > { %s2122_s10 = scalar_lea.sflag [#allocation3], %s299_s17  ;;  %s1879_s12 = scalar_lea.hbm %s2111_s22, 512 }
  0x17   : > { %p1880_p2 = scmp.ne.s32.totalorder %s2111_s22, %s1879_s12  ;;  %p1881_p3 = pneg %p2117_p0 }
  0x18   : > { %s1884_s11 = scalar_lea.hbm %s2410_s2, 1024  ;;  %p1885_p4 = scmp.lt.u32.totalorder %s2111_s22, %s2410_s2 }
  0x19   : > { %p1882_p5 = pnand %p1881_p3, %p1880_p2  ;;  %p1886_p7 = scmp.lt.u32.totalorder %s1884_s11, %s1879_s12 }
  0x1a   : > { %p1888_p13 = scmp.lt.u32.totalorder %s1879_s12, %s2111_s22 }
  0x1b   : > { %p1883_p6 = pneg %p1882_p5  ;;  %p1887_p10 = por %p1886_p7, %p1885_p4 }
  0x1d   : > { %p1889_p12 = por %p1888_p13, %p1887_p10 }
  0x1f   : > { %p1890_p1 = pnand %p1889_p12, %p1883_p6 }
  0x21   : > { %1893 = shalt.err (!%p1890_p1)
}
  0x22   : > { %s1894_s17 = scalar_lea.vmem %s2113_s30, 512  ;;  %s1993_s23 = smov [#allocation2]  }
  0x23   : > { %p1895_p2 = scmp.ne.s32.totalorder %s2113_s30, %s1894_s17  ;;  %s1899_s18 = sshll.u32 %s1993_s23, 4  ;;  %s1900_s18 = int_to_ptr.vmem [resolvable:$false] %s1899_s18 }
  0x24   : > { %s1901_s19 = scalar_lea.vmem %s1900_s18, 1024  ;;  %p1902_p9 = scmp.lt.s32.totalorder %s2113_s30, %s1900_s18 }
  0x25   : > { %p1897_p5 = pnand %p1895_p2, %p1881_p3  ;;  %p1903_p4 = scmp.lt.s32.totalorder %s1901_s19, %s1894_s17 }
  0x27   : > { %p1898_p11 = pneg %p1897_p5  ;;  %p1904_p7 = por %p1903_p4, %p1902_p9 }
  0x29   : > { %p1905_p10 = pnand %p1904_p7, %p1898_p11 }
  0x2b   : > { %1908 = shalt.err (!%p1905_p10)
}
  0x2c   : > { %s1994_s12 = smov 128   ;;  %s1995_s11 = smov 8  }
  0x2d   : > { %1793 = dma.hbm_to_vmem [thread:$0]  (!%p2117_p0), %s2111_s22, 512, %s2113_s30, %s2122_s10, %s1994_s12, %s1994_s12, %s1995_s11  }
  0x2e   : > { %p358_p12 = scmp.lt.s32.totalorder %s1991_s29, 3  ;;  %p2422_p1 = scmp.ge.s32.totalorder %s1991_s29, 1 }
  0x30   : > { %p359_p3 = pnand %p2422_p1, %p358_p12 }
  0x31   : > { %s2154_s20 = sand.u32 (!%p359_p3), 1, %s1975_s25  }
  0x32   : > { %362 = sbr.rel (%p359_p3) target bundleno = 875 (0x36b), region = 48  ;;  %s1590_s21 = sshll.u32 (!%p359_p3), %s2154_s20, 5 }
  0x33   : > { %s365_s17 = scalar_lea.sflag (!%p359_p3), [#allocation3], %s2154_s20  ;;  %s2158_s23 = scalar_lea.vmem (!%p359_p3), [#allocation2], %s1590_s21 }
  0x39   : > { %1962 = dma.done.wait (%p2089_p8), %s365_s17, 512  }
  0x3a   : > { %1964 = vsyncadd (%p2089_p8), %s365_s17, 4294966784  ;;  %p442_p9 = scmp.lt.s32.totalorder %s1983_s27, 1  ;;  %v1996_v0 = vmov 0.0   ;;  %vm1997_vm0 = vmmov 0   ;;  %vm502_vm1 = vcmask 64512   ;;  %vm628_vm2 = vcmask 1043456  }
  0x3b   : > { %1674 = vmatprep.subr.bf16.mxu1 %v1996_v0  ;;  %1676 = vmatprep.mubr.msk.bf16.mxu1 %vm1997_vm0, %v1996_v0  ;;  %s1591_s8 = sshll.u32 %s2154_s20, 3  ;;  %vm1389_vm3 = vcmask 130048   ;;  %vm1391_vm4 = vcmask 195584   ;;  %vm1393_vm5 = vcmask 261120   ;;  %p2423_p11 = scmp.ne.s32.totalorder %s2419_s14, 0 }
  0x3c   : > { %s2169_s22 = scalar_select %p442_p9, %s1983_s27, 1  ;;  %1686 = vmatprep.subr.bf16.mxu0 %v1996_v0  ;;  %1688 = vmatprep.mubr.msk.bf16.mxu0 %vm1997_vm0, %v1996_v0 }
  0x3e   : > { %s2175_s13 = sshll.u32 %s2169_s22, 5  ;;  %s1638_s11 = sshll.u32 %s2169_s22, 4 }
  0x3f   : > { %s2181_s10 = scalar_lea.vmem %s2409_s1, %s2175_s13  ;;  %s2187_s12 = scalar_lea.vmem %s2411_s3, %s2175_s13 }
  0x40   : > { %v492_v1 = vld [vmem:[%s2181_s10] sm:$0xff]  ;;  %s2196_s30 = scalar_lea.vmem %s2408_s0, %s1638_s11  ;;  %v1607_v8 = vld [vmem:[%s2181_s10 + $0x8] sm:$0xff]  ;;  %v1616_v15 = vld [vmem:[%s2181_s10 + $0x10] sm:$0xff]  ;;  %s484_s18 = scalar_lea.vmem %s2413_s5, %s2169_s22 }
  0x41   : > { %v493_v2 = vpack.c.bf16 %v492_v1, %v492_v1  ;;  %v494_v3 = vld [vmem:[%s2187_s12] sm:$0xff]  ;;  %v723_v9 = vpack.c.bf16 %v1607_v8, %v1607_v8  ;;  %v1608_v11 = vld [vmem:[%s2187_s12 + $0x8] sm:$0xff]  ;;  %v942_v16 = vpack.c.bf16 %v1616_v15, %v1616_v15  ;;  %v1617_v18 = vld [vmem:[%s2187_s12 + $0x10] sm:$0xff]  ;;  %s487_s11 = scalar_lea.vmem %s2414_s6, %s2169_s22  ;;  %s2270_s17 = scalar_lea.vmem %s2412_s4, %s2175_s13 }
  0x42   : > { %v495_v5 = vpack.c.bf16 %v494_v3, %v494_v3  ;;  %v491_v6 = vld [vmem:[%s2196_s30] sm:$0xf]  ;;  %v726_v12 = vpack.c.bf16 %v1608_v11, %v1608_v11  ;;  %v1606_v13 = vld [vmem:[%s2196_s30 + $0x4] sm:$0xf]  ;;  %v945_v19 = vpack.c.bf16 %v1617_v18, %v1617_v18  ;;  %v1615_v20 = vld [vmem:[%s2196_s30 + $0x8] sm:$0xf] }
  0x43   : > { %v507_v4 = vsel %vm502_vm1, %v493_v2, 0  ;;  %v731_v10 = vsel %vm502_vm1, %v723_v9, 0  ;;  %v950_v17 = vsel %vm502_vm1, %v942_v16, 0  ;;  %v1625_v22 = vld [vmem:[%s2181_s10 + $0x18] sm:$0xff]  ;;  %v1624_v27 = vld [vmem:[%s2196_s30 + $0xc] sm:$0xf] }
  0x44   : > { %1675 = vmatpush3.bf16.xpose.msra.mxu1 %v507_v4  ;;  %v556_v7 = vsel %vm502_vm1, %v495_v5, 0  ;;  %v774_v14 = vsel %vm502_vm1, %v726_v12, 0  ;;  %v993_v21 = vsel %vm502_vm1, %v945_v19, 0  ;;  %v1161_v23 = vpack.c.bf16 %v1625_v22, %v1625_v22  ;;  %v1626_v25 = vld [vmem:[%s2187_s12 + $0x18] sm:$0xff]  ;;  %v1600_v29 = vld [vmem:[%s484_s18] ss:$0 sm:$0xff] }
  0x45   : > { %1680 = vmatprep.subr.bf16.mxu1 %v1996_v0  ;;  %v1164_v26 = vpack.c.bf16 %v1626_v25, %v1626_v25  ;;  %v1602_v36 = vld [vmem:[%s487_s11] ss:$0 sm:$0xff]  ;;  %s1999_s13 = smov 16   ;;  %s2000_s30 = smov 24  }
  0x46   : > { %v1169_v24 = vsel %vm502_vm1, %v1161_v23, 0  ;;  %v621_v61 = vld [vmem:[%s2270_s17] sm:$0xff]  ;;  %s1634_s10 = sshll.u32 %s1983_s27, 7  ;;  %s440_s18 = scalar_lea.vmem [#allocation5], %s1591_s8 }
  0x47   : > { %v1212_v28 = vsel %vm502_vm1, %v1164_v26, 0  ;;  %v622_v63 = vpack.c.bf16 %v621_v61, %v621_v61  ;;  %v619_v26 = vld [vmem:[%s2158_s23] sm:$0xff]  ;;  %s1410_s19 = sshll.u32 %s440_s18, 4  ;;  %s2359_s22 = scalar_lea.hbm %s2415_s7, %s1634_s10  ;;  %s2361_s19 = int_to_ptr.vmem [resolvable:$true] %s1410_s19 }
  0x48   : > { %s1396_s27 = scalar_lea.sflag [#allocation4], %s2154_s20  ;;  %s1909_s21 = scalar_lea.vmem %s2361_s19, 128 }
  0x49   : > { %v630_v4 = vsel %vm628_vm2, %v622_v63, 0  ;;  %p1910_p8 = scmp.ne.s32.totalorder %s2361_s19, %s1909_s21 }
  0x4a   : > { %1687 = vmatpush3.bf16.msra.mxu0 %v630_v4 }
  0x4b   : > { %1677 = vmatmul.mubr.msk.bf16.vlgmr.msra.gmra.mrb[0].mxu1 %vm502_vm1, %v491_v6  ;;  %1692 = vmatprep.subr.bf16.mxu0 %v1996_v0  ;;  %p1911_p0 = pnand %p1910_p8, %p2423_p11 }
  0x4c   : > { %1681 = vmatpush3.bf16.xpose.msra.mxu1 %v556_v7  ;;  %1682 = vmatprep.mubr.msk.bf16.mxu1 %vm1997_vm0, %v1996_v0 }
  0x4d   : > { %1698 = vmatprep.subr.bf16.mxu1 %v1996_v0  ;;  %p1912_p6 = pneg %p1911_p0 }
  0x53   : > { %1683 = vmatmul.mubr.msk.bf16.vlgmr.msra.gmra.mrb[4].mxu1 %vm502_vm1, %v491_v6 }
  0x54   : > { %1699 = vmatpush3.bf16.xpose.msra.mxu1 %v731_v10  ;;  %1700 = vmatprep.mubr.msk.bf16.mxu1 %vm1997_vm0, %v1996_v0 }
  0x55   : > { %1704 = vmatprep.subr.bf16.mxu1 %v1996_v0 }
  0x5b   : > { %1701 = vmatmul.mubr.msk.bf16.vlgmr.msra.gmra.mrb[8].mxu1 %vm502_vm1, %v1606_v13 }
  0x5c   : > { %1705 = vmatpush3.bf16.xpose.msra.mxu1 %v774_v14  ;;  %1706 = vmatprep.mubr.msk.bf16.mxu1 %vm1997_vm0, %v1996_v0 }
  0x5d   : > { %1722 = vmatprep.subr.bf16.mxu1 %v1996_v0 }
  0x63   : > { %1707 = vmatmul.mubr.msk.bf16.vlgmr.msra.gmra.mrb[12].mxu1 %vm502_vm1, %v1606_v13 }
  0x64   : > { %1723 = vmatpush3.bf16.xpose.msra.mxu1 %v950_v17  ;;  %1724 = vmatprep.mubr.msk.bf16.mxu1 %vm1997_vm0, %v1996_v0 }
  0x65   : > { %1728 = vmatprep.subr.bf16.mxu1 %v1996_v0 }
  0x6b   : > { %1725 = vmatmul.mubr.msk.bf16.vlgmr.msra.gmra.mrb[16].mxu1 %vm502_vm1, %v1615_v20 }
  0x6c   : > { %1729 = vmatpush3.bf16.xpose.msra.mxu1 %v993_v21  ;;  %1730 = vmatprep.mubr.msk.bf16.mxu1 %vm1997_vm0, %v1996_v0 }
  0x6d   : > { %1746 = vmatprep.subr.bf16.mxu1 %v1996_v0 }
  0x73   : > { %1731 = vmatmul.mubr.msk.bf16.vlgmr.msra.gmra.mrb[20].mxu1 %vm502_vm1, %v1615_v20 }
  0x74   : > { %1747 = vmatpush3.bf16.xpose.msra.mxu1 %v1169_v24  ;;  %1748 = vmatprep.mubr.msk.bf16.mxu1 %vm1997_vm0, %v1996_v0 }
  0x75   : > { %1752 = vmatprep.subr.bf16.mxu1 %v1996_v0 }
  0x7b   : > { %1749 = vmatmul.mubr.msk.bf16.vlgmr.msra.gmra.mrb[24].mxu1 %vm502_vm1, %v1624_v27 }
  0x7c   : > { %1753 = vmatpush3.bf16.xpose.msra.mxu1 %v1212_v28  ;;  %1754 = vmatprep.mubr.msk.bf16.mxu1 %vm1997_vm0, %v1996_v0  ;;  %v620_v28 = vpack.c.bf16 %v619_v26, %v619_v26 }
  0x83   : > { %1755 = vmatmul.mubr.msk.bf16.vlgmr.msra.gmra.mrb[28].mxu1 %vm502_vm1, %v1624_v27 }
 0x11e   : > { %v543_v30 = vpop.f32.mrb[0].mxu1 }
 0x11f   : > { %v2248_v31 = vadd.f32 %v1600_v29, %v543_v30  ;;  %v1678_v32 = vpop.f32.mrb[1].mxu1 }
 0x120   : > { %v546_v33 = vpop.f32.mrb[2].mxu1 }
 0x121   : > { %v1679_v34 = vpop.f32.mrb[3].mxu1  ;;  %v598_v35 = vsel %vm502_vm1, %v2248_v31, -inf }
 0x122   : > { %599 = vmax.xlane.f32.xlu0 %v598_v35 }
 0x126   : > { %v592_v37 = vpop.f32.mrb[4].mxu1 }
 0x127   : > { %v593_v38 = vadd.f32 %v1602_v36, %v592_v37  ;;  %v1684_v39 = vpop.f32.mrb[5].mxu1 }
 0x128   : > { %v595_v40 = vpop.f32.mrb[6].mxu1 }
 0x129   : > { %v1685_v41 = vpop.f32.mrb[7].mxu1  ;;  %v601_v42 = vsel %vm502_vm1, %v593_v38, -inf }
 0x12a   : > { %602 = vmax.xlane.f32.xlu0 %v601_v42 }
 0x12e   : > { %v767_v43 = vpop.f32.mrb[8].mxu1 }
 0x12f   : > { %v2257_v44 = vadd.f32 %v1600_v29, %v767_v43  ;;  %v1702_v45 = vpop.f32.mrb[9].mxu1 }
 0x130   : > { %v770_v46 = vpop.f32.mrb[10].mxu1  ;;  %v1611_v45 = vld [vmem:[%s2158_s23 + $0x8] sm:$0xff] }
 0x131   : > { %v1703_v47 = vpop.f32.mrb[11].mxu1  ;;  %v816_v48 = vsel %vm502_vm1, %v2257_v44, -inf }
 0x132   : > { %817 = vmax.xlane.f32.xlu1 %v816_v48 }
 0x136   : > { %v810_v49 = vpop.f32.mrb[12].mxu1 }
 0x137   : > { %v811_v50 = vadd.f32 %v1602_v36, %v810_v49  ;;  %v1708_v51 = vpop.f32.mrb[13].mxu1 }
 0x138   : > { %v813_v52 = vpop.f32.mrb[14].mxu1 }
 0x139   : > { %v819_v53 = vsel %vm502_vm1, %v811_v50, -inf  ;;  %v1709_v54 = vpop.f32.mrb[15].mxu1 }
 0x13a   : > { %820 = vmax.xlane.f32.xlu1 %v819_v53  ;;  %v839_v53 = vpack.c.bf16 %v1611_v45, %v1611_v45 }
 0x13e   : > { %v986_v55 = vpop.f32.mrb[16].mxu1 }
 0x13f   : > { %v2262_v56 = vadd.f32 %v1600_v29, %v986_v55  ;;  %v1726_v57 = vpop.f32.mrb[17].mxu1 }
 0x140   : > { %v989_v58 = vpop.f32.mrb[18].mxu1 }
 0x141   : > { %v1727_v59 = vpop.f32.mrb[19].mxu1  ;;  %v1035_v60 = vsel %vm502_vm1, %v2262_v56, -inf  ;;  %v895_v58 = vsel %vm628_vm2, %v839_v53, 0 }
 0x142   : > { %1036 = vmax.xlane.f32.xlu0 %v1035_v60 }
 0x146   : > { %v1029_v62 = vpop.f32.mrb[20].mxu1 }
 0x147   : > { %v2273_v1 = vadd.f32 %v1602_v36, %v1029_v62  ;;  %v1732_v2 = vpop.f32.mrb[21].mxu1 }
 0x148   : > { %v1032_v3 = vpop.f32.mrb[22].mxu1 }
 0x149   : > { %v1038_v5 = vsel %vm502_vm1, %v2273_v1, -inf  ;;  %v1733_v6 = vpop.f32.mrb[23].mxu1 }
 0x14a   : > { %1039 = vmax.xlane.f32.xlu1 %v1038_v5 }
 0x14e   : > { %v1205_v7 = vpop.f32.mrb[24].mxu1 }
 0x14f   : > { %v2279_v8 = vadd.f32 %v1600_v29, %v1205_v7  ;;  %v1750_v9 = vpop.f32.mrb[25].mxu1 }
 0x150   : > { %v1208_v10 = vpop.f32.mrb[26].mxu1  ;;  %v1620_v9 = vld [vmem:[%s2158_s23 + $0x10] sm:$0xff] }
 0x151   : > { %v1751_v11 = vpop.f32.mrb[27].mxu1  ;;  %v1254_v12 = vsel %vm502_vm1, %v2279_v8, -inf }
 0x152   : > { %1255 = vmax.xlane.f32.xlu0 %v1254_v12 }
 0x156   : > { %v1248_v13 = vpop.f32.mrb[28].mxu1 }
 0x157   : > { %v2283_v14 = vadd.f32 %v1602_v36, %v1248_v13  ;;  %v1756_v15 = vpop.f32.mrb[29].mxu1  ;;  %v676_v36 = vsel %vm628_vm2, %v620_v28, 0 }
 0x158   : > { %v1251_v16 = vpop.f32.mrb[30].mxu1 }
 0x159   : > { %v1257_v17 = vsel %vm502_vm1, %v2283_v14, -inf  ;;  %v1757_v18 = vpop.f32.mrb[31].mxu1 }
 0x15a   : > { %1258 = vmax.xlane.f32.xlu1 %v1257_v17 }
 0x1af   : > { %v600_v19 = vpop.xlane.xlu0 %599 }
 0x1b7   : > { %v603_v20 = vpop.xlane.xlu0 %602 }
 0x1b8   : > { %v604_v21 = vmax.f32 %v600_v19, %v603_v20 }
 0x1ba   : > { %v608_v22 = vsub.f32 %v593_v38, %v604_v21  ;;  %v605_v24 = vsub.f32 %v2248_v31, %v604_v21  ;;  %v1612_v38 = vld [vmem:[%s2270_s17 + $0x8] sm:$0xff] }
 0x1bb   : > { %v842_v39 = vpack.c.bf16 %v1612_v38, %v1612_v38 }
 0x1bc   : > { %v609_v23 = vmul.f32 1.442695, %v608_v22  ;;  %v606_v27 = vmul.f32 1.442695, %v605_v24  ;;  %v1629_v24 = vld [vmem:[%s2158_s23 + $0x18] sm:$0xff]  ;;  %s1998_s23 = smov 8  }
 0x1bd   : > { %v849_v43 = vsel %vm628_vm2, %v842_v39, 0 }
 0x1be   : > { %1855 = vpow2.f32 %v609_v23 }
 0x1bf   : > { %v818_v25 = vpop.xlane.xlu1 %817  ;;  %1857 = vpow2.f32 %v606_v27 }
 0x1c7   : > { %v821_v29 = vpop.xlane.xlu1 %820 }
 0x1c8   : > { %v822_v30 = vmax.f32 %v818_v25, %v821_v29  ;;  %v2289_v32 = vpop.eup %1855  ;;  %v1277_v25 = vpack.c.bf16 %v1629_v24, %v1629_v24 }
 0x1c9   : > { %v624_v35 = vpack.c.bf16 %v2289_v32, %v2289_v32  ;;  %v2300_v40 = vpop.eup %1857  ;;  %v614_v21 = vsel %vm502_vm1, %v2289_v32, 0.0 }
 0x1ca   : > { %v823_v33 = vsub.f32 %v2257_v44, %v822_v30  ;;  %v826_v34 = vsub.f32 %v811_v50, %v822_v30  ;;  %v623_v42 = vpack.c.bf16 %v2300_v40, %v2300_v40  ;;  %v611_v20 = vsel %vm502_vm1, %v2300_v40, 0.0 }
 0x1cb   : > { %1689 = vmatmul.mubr.msk.bf16.vlgmr.msra.gmra.mrb[0].mxu0 %vm502_vm1, %v624_v35  ;;  %v1333_v27 = vsel %vm628_vm2, %v1277_v25, 0 }
 0x1cc   : > { %v824_v31 = vmul.f32 1.442695, %v823_v33  ;;  %v827_v37 = vmul.f32 1.442695, %v826_v34  ;;  %1693 = vmatpush3.bf16.msra.mxu0 %v676_v36  ;;  %1694 = vmatprep.mubr.msk.bf16.mxu0 %vm1997_vm0, %v1996_v0 }
 0x1cd   : > { %1710 = vmatprep.subr.bf16.mxu0 %v1996_v0 }
 0x1ce   : > { %1859 = vpow2.f32 %v824_v31 }
 0x1cf   : > { %1861 = vpow2.f32 %v827_v37  ;;  %v1037_v41 = vpop.xlane.xlu0 %1036 }
 0x1d7   : > { %v1040_v44 = vpop.xlane.xlu1 %1039  ;;  %1695 = vmatmul.mubr.msk.bf16.vlgmr.msra.gmra.mrb[0].mxu0 %vm502_vm1, %v623_v42 }
 0x1d8   : > { %v1860_v46 = vpop.eup %1859  ;;  %v1041_v47 = vmax.f32 %v1037_v41, %v1040_v44  ;;  %1711 = vmatpush3.bf16.msra.mxu0 %v849_v43  ;;  %1712 = vmatprep.mubr.msk.bf16.mxu0 %vm1997_vm0, %v1996_v0 }
 0x1d9   : > { %v1862_v48 = vpop.eup %1861  ;;  %v829_v49 = vsel %vm502_vm1, %v1860_v46, 0.0  ;;  %1716 = vmatprep.subr.bf16.mxu0 %v1996_v0  ;;  %v843_v7 = vpack.c.bf16 %v1860_v46, %v1860_v46 }
 0x1da   : > { %v1042_v50 = vsub.f32 %v2262_v56, %v1041_v47  ;;  %v1045_v51 = vsub.f32 %v2273_v1, %v1041_v47  ;;  %v832_v52 = vsel %vm502_vm1, %v1862_v48, 0.0  ;;  %830 = vadd.xlane.f32.xlu0 %v829_v49  ;;  %v844_v57 = vpack.c.bf16 %v1862_v48, %v1862_v48  ;;  %v1621_v56 = vld [vmem:[%s2270_s17 + $0x10] sm:$0xff] }
 0x1db   : > { %833 = vadd.xlane.f32.xlu1 %v832_v52  ;;  %v1061_v60 = vpack.c.bf16 %v1621_v56, %v1621_v56 }
 0x1dc   : > { %v1043_v54 = vmul.f32 1.442695, %v1042_v50  ;;  %v1046_v55 = vmul.f32 1.442695, %v1045_v51 }
 0x1dd   : > { %v1068_v3 = vsel %vm628_vm2, %v1061_v60, 0 }
 0x1de   : > { %1863 = vpow2.f32 %v1043_v54 }
 0x1df   : > { %1865 = vpow2.f32 %v1046_v55  ;;  %1713 = vmatmul.mubr.msk.bf16.vlgmr.msra.gmra.mrb[4].mxu0 %vm502_vm1, %v844_v57  ;;  %v1256_v59 = vpop.xlane.xlu0 %1255 }
 0x1e0   : > { %1717 = vmatpush3.bf16.msra.mxu0 %v895_v58  ;;  %1718 = vmatprep.mubr.msk.bf16.mxu0 %vm1997_vm0, %v1996_v0 }
 0x1e1   : > { %1734 = vmatprep.subr.bf16.mxu0 %v1996_v0 }
 0x1e7   : > { %v1259_v61 = vpop.xlane.xlu1 %1258 }
 0x1e8   : > { %v1864_v62 = vpop.eup %1863  ;;  %v1260_v63 = vmax.f32 %v1256_v59, %v1259_v61 }
 0x1e9   : > { %v1866_v1 = vpop.eup %1865  ;;  %v1048_v2 = vsel %vm502_vm1, %v1864_v62, 0.0  ;;  %v1062_v22 = vpack.c.bf16 %v1864_v62, %v1864_v62 }
 0x1ea   : > { %v1261_v4 = vsub.f32 %v2279_v8, %v1260_v63  ;;  %v1264_v5 = vsub.f32 %v2283_v14, %v1260_v63  ;;  %v1051_v6 = vsel %vm502_vm1, %v1866_v1, 0.0  ;;  %1049 = vadd.xlane.f32.xlu0 %v1048_v2  ;;  %v1058_v8 = vpack.c.bf16 %v1620_v9, %v1620_v9  ;;  %v1630_v14 = vld [vmem:[%s2270_s17 + $0x18] sm:$0xff]  ;;  %s2001_s17 = smov [#allocation5]  }
 0x1eb   : > { %1052 = vadd.xlane.f32.xlu1 %v1051_v6  ;;  %1719 = vmatmul.mubr.msk.bf16.vlgmr.msra.gmra.mrb[4].mxu0 %vm502_vm1, %v843_v7  ;;  %v1063_v12 = vpack.c.bf16 %v1866_v1, %v1866_v1  ;;  %v1280_v19 = vpack.c.bf16 %v1630_v14, %v1630_v14 }
 0x1ec   : > { %v1262_v10 = vmul.f32 1.442695, %v1261_v4  ;;  %v1265_v11 = vmul.f32 1.442695, %v1264_v5  ;;  %1735 = vmatpush3.bf16.msra.mxu0 %v1068_v3  ;;  %1736 = vmatprep.mubr.msk.bf16.mxu0 %vm1997_vm0, %v1996_v0  ;;  %v1114_v13 = vsel %vm628_vm2, %v1058_v8, 0 }
 0x1ed   : > { %1740 = vmatprep.subr.bf16.mxu0 %v1996_v0  ;;  %v1287_v23 = vsel %vm628_vm2, %v1280_v19, 0 }
 0x1ee   : > { %1867 = vpow2.f32 %v1262_v10 }
 0x1ef   : > { %1869 = vpow2.f32 %v1265_v11 }
 0x1f3   : > { %1737 = vmatmul.mubr.msk.bf16.vlgmr.msra.gmra.mrb[8].mxu0 %vm502_vm1, %v1063_v12 }
 0x1f4   : > { %1741 = vmatpush3.bf16.msra.mxu0 %v1114_v13  ;;  %1742 = vmatprep.mubr.msk.bf16.mxu0 %vm1997_vm0, %v1996_v0 }
 0x1f5   : > { %1758 = vmatprep.subr.bf16.mxu0 %v1996_v0 }
 0x1f8   : > { %v1868_v15 = vpop.eup %1867 }
 0x1f9   : > { %v1870_v16 = vpop.eup %1869  ;;  %v1267_v17 = vsel %vm502_vm1, %v1868_v15, 0.0  ;;  %v1281_v28 = vpack.c.bf16 %v1868_v15, %v1868_v15 }
 0x1fa   : > { %v1270_v18 = vsel %vm502_vm1, %v1870_v16, 0.0  ;;  %1268 = vadd.xlane.f32.xlu0 %v1267_v17  ;;  %v1282_v26 = vpack.c.bf16 %v1870_v16, %v1870_v16 }
 0x1fb   : > { %1271 = vadd.xlane.f32.xlu1 %v1270_v18 }
 0x1fe   : > { %612 = vadd.xlane.f32.xlu0 %v611_v20 }
 0x1ff   : > { %615 = vadd.xlane.f32.xlu1 %v614_v21  ;;  %1743 = vmatmul.mubr.msk.bf16.vlgmr.msra.gmra.mrb[8].mxu0 %vm502_vm1, %v1062_v22 }
 0x200   : > { %1759 = vmatpush3.bf16.msra.mxu0 %v1287_v23  ;;  %1760 = vmatprep.mubr.msk.bf16.mxu0 %vm1997_vm0, %v1996_v0 }
 0x201   : > { %1764 = vmatprep.subr.bf16.mxu0 %v1996_v0 }
 0x207   : > { %1761 = vmatmul.mubr.msk.bf16.vlgmr.msra.gmra.mrb[12].mxu0 %vm502_vm1, %v1282_v26 }
 0x208   : > { %1765 = vmatpush3.bf16.msra.mxu0 %v1333_v27  ;;  %1766 = vmatprep.mubr.msk.bf16.mxu0 %vm1997_vm0, %v1996_v0 }
 0x213   : > { %1767 = vmatmul.mubr.msk.bf16.vlgmr.msra.gmra.mrb[12].mxu0 %vm502_vm1, %v1281_v28 }
 0x267   : > { %v831_v32 = vpop.xlane.xlu0 %830 }
 0x268   : > { %v834_v34 = vpop.xlane.xlu1 %833 }
 0x269   : > { %v835_v36 = vadd.f32 %v834_v34, %v831_v32 }
 0x26b   : > { %1871 = vrcp.f32 %v835_v36 }
 0x275   : > { %v1872_v31 = vpop.eup %1871 }
 0x277   : > { %v1050_v40 = vpop.xlane.xlu0 %1049 }
 0x278   : > { %v1053_v42 = vpop.xlane.xlu1 %1052 }
 0x279   : > { %v1054_v0 = vadd.f32 %v1053_v42, %v1050_v40 }
 0x27b   : > { %1873 = vrcp.f32 %v1054_v0 }
 0x285   : > { %v1874_v44 = vpop.eup %1873 }
 0x287   : > { %v1269_v48 = vpop.xlane.xlu0 %1268 }
 0x288   : > { %v1272_v50 = vpop.xlane.xlu1 %1271 }
 0x289   : > { %v1273_v52 = vadd.f32 %v1272_v50, %v1269_v48 }
 0x28b   : > { %1875 = vrcp.f32 %v1273_v52  ;;  %v613_v60 = vpop.xlane.xlu0 %612 }
 0x28c   : > { %v616_v59 = vpop.xlane.xlu1 %615 }
 0x28d   : > { %v617_v61 = vadd.f32 %v616_v59, %v613_v60 }
 0x28f   : > { %1877 = vrcp.f32 %v617_v61 }
 0x295   : > { %v1876_v53 = vpop.eup %1875 }
 0x299   : > { %v1878_v62 = vpop.eup %1877 }
 0x2aa   : > { %v712_v29 = vpop.f32.mrb[0].mxu0 }
 0x2ab   : > { %v1696_v30 = vpop.f32.mrb[1].mxu0  ;;  %v718_v2 = vmul.f32 %v1878_v62, %v712_v29 }
 0x2ac   : > { %v715_v33 = vpop.f32.mrb[2].mxu0 }
 0x2ad   : > { %v1697_v35 = vpop.f32.mrb[3].mxu0 }
 0x2be   : > { %v931_v37 = vpop.f32.mrb[4].mxu0 }
 0x2bf   : > { %v937_v38 = vmul.f32 %v1872_v31, %v931_v37  ;;  %v1720_v39 = vpop.f32.mrb[5].mxu0 }
 0x2c0   : > { %v934_v41 = vpop.f32.mrb[6].mxu0 }
 0x2c1   : > { %v1721_v43 = vpop.f32.mrb[7].mxu0  ;;  %1377 = vrot.lane.b32.xlu0 %v937_v38, %s1998_s23  ;;  %s1913_s23 = sshll.u32 %s2001_s17, 4  ;;  %s1914_s23 = int_to_ptr.vmem [resolvable:$false] %s1913_s23 }
 0x2c2   : > { %p1916_p13 = scmp.lt.s32.totalorder %s2361_s19, %s1914_s23 }
 0x2d2   : > { %v1150_v45 = vpop.f32.mrb[8].mxu0 }
 0x2d3   : > { %v1156_v46 = vmul.f32 %v1874_v44, %v1150_v45  ;;  %v1744_v47 = vpop.f32.mrb[9].mxu0 }
 0x2d4   : > { %v1153_v49 = vpop.f32.mrb[10].mxu0 }
 0x2d5   : > { %v1745_v51 = vpop.f32.mrb[11].mxu0  ;;  %1381 = vrot.lane.b32.xlu1 %v1156_v46, %s1999_s13  ;;  %s1915_s13 = scalar_lea.vmem %s1914_s23, 256 }
 0x2d6   : > { %p1917_p2 = scmp.lt.s32.totalorder %s1915_s13, %s1909_s21 }
 0x2d8   : > { %p1918_p5 = por %p1917_p2, %p1916_p13 }
 0x2da   : > { %p1919_p4 = pnand %p1918_p5, %p1912_p6 }
 0x2e6   : > { %v1369_v54 = vpop.f32.mrb[12].mxu0 }
 0x2e7   : > { %v1375_v55 = vmul.f32 %v1876_v53, %v1369_v54  ;;  %v1768_v57 = vpop.f32.mrb[13].mxu0 }
 0x2e8   : > { %v1372_v58 = vpop.f32.mrb[14].mxu0 }
 0x2e9   : > { %v1769_v56 = vpop.f32.mrb[15].mxu0  ;;  %1385 = vrot.lane.b32.xlu1 %v1375_v55, %s2000_s30 }
 0x333   : > { %v1378_v63 = vpop.permute.xlu0 %1377 }
 0x334   : > { %v1388_v3 = vsel %vm502_vm1, %v718_v2, %v1378_v63 }
 0x347   : > { %v1382_v1 = vpop.permute.xlu1 %1381 }
 0x348   : > { %v1390_v4 = vsel %vm1389_vm3, %v1388_v3, %v1382_v1 }
 0x35b   : > { %v1386_v5 = vpop.permute.xlu1 %1385 }
 0x35c   : > { %v1392_v6 = vsel %vm1391_vm4, %v1390_v4, %v1386_v5 }
 0x35d   : > { %1394 = vst.msk [vmem:[%s440_s18] sm:$0xff] %vm1393_vm5, %v1392_v6 }
 0x35e   : > { %1922 = shalt.err (!%p1919_p4)
}
 0x35f   : > { %s1923_s20 = scalar_lea.hbm %s2359_s22, 128  ;;  %s1927_s10 = scalar_lea.hbm %s2415_s7, 256 }
 0x360   : > { %p1924_p7 = scmp.ne.s32.totalorder %s2359_s22, %s1923_s20  ;;  %p1928_p1 = scmp.lt.u32.totalorder %s2359_s22, %s2415_s7 }
 0x361   : > { %p1929_p3 = scmp.lt.u32.totalorder %s1927_s10, %s1923_s20  ;;  %p1931_p8 = scmp.lt.u32.totalorder %s1923_s20, %s2359_s22 }
 0x362   : > { %p1925_p10 = pnand %p1924_p7, %p2423_p11 }
 0x363   : > { %p1930_p9 = por %p1929_p3, %p1928_p1 }
 0x364   : > { %p1926_p12 = pneg %p1925_p10 }
 0x365   : > { %p1932_p0 = por %p1931_p8, %p1930_p9 }
 0x367   : > { %p1933_p6 = pnand %p1932_p0, %p1926_p12 }
 0x369   : > { %1936 = shalt.err (!%p1933_p6)
}
 0x36a   : > { %1788 = dma.vmem_to_hbm [thread:$0]  (%p2423_p11), %s2361_s19, 128, %s2359_s22, %s1396_s27  }
 0x36b PF: > { %s1422_s11 = sand.u32 1, %s1971_s24   ;;  %p2424_p13 = scmp.ne.s32.totalorder %s2420_s16, 0 }
 0x36c   : > { %p2425_p2 = scmp.ge.s32.totalorder %s1991_s29, 2  ;;  %s1423_s21 = scalar_lea.sflag [#allocation4], %s1422_s11 }
 0x36e   : > { %p1795_p5 = pnand %p2425_p2, %p2424_p13 }
 0x370   : > { %1966 = dma.done.wait (!%p1795_p5), %s1423_s21, 128  }
 0x371   : > { %1968 = vsyncadd (!%p1795_p5), %s1423_s21, 4294967168  ;;  %s23_s29 = sadd.s32 1, %s1991_s29   ;;  %s2426_s24 = smov %s1975_s25 }
 0x372   : > { %p20_p4 = scmp.ge.s32.totalorder %s23_s29, 4   ;;  %s2427_s25 = smov %s1979_s26 }
 0x373   : > { %s2428_s26 = smov %s2098_s15  ;;  %s2429_s27 = smov %s1987_s28 }
 0x374   : > { %s2430_s28 = smov %s2432_s9  ;;  %22 = sbr.rel (!%p20_p4) target bundleno = 6 (0x6), region = 126 }
 0x37b   :  { %1428 = vsyncpa [#allocation3], 1 }
 0x37c   :  { %1430 = vsyncpa [#allocation3 + $0x1], 1 }
 0x37d   :  { %1431 = vsyncpa [#allocation4], 1 }
 0x37e   :  { %1433 = vsyncpa [#allocation4 + $0x1], 1 }

</bundles_post_ra>
